<compile_context>
chip_gen: v5e
topology: v5e:2x2
jax: 0.10.0
libtpu: 0.0.40
codegen_flags: <defaults>
</compile_context>

<pallas_src>
import jax
import jax.numpy as jnp
from jax import lax
from jax.experimental import pallas as pl
from jax.experimental.pallas import tpu as pltpu

IN_DIM = 28 * 28          # 784
HIDDEN = 400              # logical hidden size of the PyTorch module
HID_PAD = 512             # padded hidden: 2x256 (v6e/v7x MXU) = 4x128 lanes
OUT_DIM = 10
OUT_PAD = 128             # lane-dense padded class dimension
BN_EPS = 1e-5
BATCH_ALIGN = 8           # sublane multiple


def _net_kernel(n_ref, x_ref, w1_ref, b1_ref, w3_ref, b3_ref,
                gamma_ref, beta_ref, w4_ref, b4_ref, o_ref):
    bp = x_ref.shape[0]
    n = n_ref[0]                                        # true (unpadded) batch
    inv_n = 1.0 / n.astype(jnp.float32)

    # Row mask that removes zero-padded batch rows from the BN statistics.
    row_ids = lax.broadcasted_iota(jnp.int32, (bp, 1), 0)
    row_mask = (row_ids < n).astype(jnp.float32)        # (Bp, 1)

    x = x_ref[...]                                      # (Bp, 784) bf16

    # fc1 + ReLU  (bf16 operands, f32 MXU accumulation)
    h = jnp.dot(x, w1_ref[...], preferred_element_type=jnp.float32) + b1_ref[...]
    h = jnp.maximum(h, 0.0)                             # (Bp, 512) f32

    # fc3 + ReLU
    h = jnp.dot(h.astype(jnp.bfloat16), w3_ref[...],
                preferred_element_type=jnp.float32) + b3_ref[...]
    h = jnp.maximum(h, 0.0)                             # (Bp, 512) f32

    # BatchNorm1d: training-mode batch stats over the true batch rows.
    # Single pass: sum and sum-of-squares, var = E[h^2] - E[h]^2.
    hm = h * row_mask
    s1 = jnp.sum(hm, axis=0, keepdims=True)             # (1, 512)
    s2 = jnp.sum(hm * h, axis=0, keepdims=True)         # (1, 512)  mask^2 == mask
    mean = s1 * inv_n
    var = s2 * inv_n - mean * mean
    h = (h - mean) * lax.rsqrt(var + BN_EPS)
    h = h * gamma_ref[...] + beta_ref[...]              # padded channels stay 0

    # fc4 + ReLU (padded class columns come out exactly 0)
    logits = jnp.dot(h.astype(jnp.bfloat16), w4_ref[...],
                     preferred_element_type=jnp.float32) + b4_ref[...]
    logits = jnp.maximum(logits, 0.0)                   # (Bp, 128) f32

    # log_softmax over the 10 real classes; mask padded columns to -inf first.
    col_ids = lax.broadcasted_iota(jnp.int32, logits.shape, 1)
    logits = jnp.where(col_ids < OUT_DIM, logits, jnp.float32(-1e30))
    m = jnp.max(logits, axis=-1, keepdims=True)
    s = logits - m
    lse = jnp.log(jnp.sum(jnp.exp(s), axis=-1, keepdims=True))
    o_ref[...] = s - lse


@jax.jit
def net_forward(x_nchw, params):
    """x_nchw: (B, 1, 28, 28) float32 -> (B, 10) float32 log-probabilities."""
    b = x_nchw.shape[0]
    bp = ((b + BATCH_ALIGN - 1) // BATCH_ALIGN) * BATCH_ALIGN

    x = x_nchw.reshape(b, IN_DIM).astype(jnp.bfloat16)  # same as input.view(-1,784)
    if bp != b:
        x = jnp.pad(x, ((0, bp - b), (0, 0)))
    n = jnp.array([b], dtype=jnp.int32)                 # true batch count (SMEM)

    (w1, b1, w3, b3, gamma, beta, w4, b4) = params

    vmem = pl.BlockSpec(memory_space=pltpu.MemorySpace.VMEM)
    smem = pl.BlockSpec(memory_space=pltpu.MemorySpace.SMEM)

    out = pl.pallas_call(
        _net_kernel,
        out_shape=jax.ShapeDtypeStruct((bp, OUT_PAD), jnp.float32),
        in_specs=[smem] + [vmem] * 9,
        out_specs=vmem,
        compiler_params=pltpu.CompilerParams(
            vmem_limit_bytes=32 * 1024 * 1024),
    )(n, x, w1, b1, w3, b3, gamma, beta, w4, b4)

    return out[:b, :OUT_DIM]


def init_params(key):
    """Synthetic parameters matching PyTorch Linear init ranges, padded for TPU."""
    ks = jax.random.split(key, 6)

    def linear(kw, kb, fan_in, fan_out, pad_in, pad_out):
        bound = 1.0 / jnp.sqrt(fan_in)
        w = jax.random.uniform(kw, (fan_in, fan_out), jnp.float32, -bound, bound)
        bias = jax.random.uniform(kb, (1, fan_out), jnp.float32, -bound, bound)
        w = jnp.pad(w, ((0, pad_in - fan_in), (0, pad_out - fan_out)))
        bias = jnp.pad(bias, ((0, 0), (0, pad_out - fan_out)))
        return w.astype(jnp.bfloat16), bias              # weights bf16, bias f32

    w1, b1 = linear(ks[0], ks[1], IN_DIM, HIDDEN, IN_DIM, HID_PAD)
    w3, b3 = linear(ks[2], ks[3], HIDDEN, HIDDEN, HID_PAD, HID_PAD)
    w4, b4 = linear(ks[4], ks[5], HIDDEN, OUT_DIM, HID_PAD, OUT_PAD)
    # BatchNorm1d affine init; padded channels get gamma=0, beta=0 so they
    # remain exactly 0 through BN.
    gamma = jnp.zeros((1, HID_PAD), jnp.float32).at[:, :HIDDEN].set(1.0)
    beta = jnp.zeros((1, HID_PAD), jnp.float32)
    return (w1, b1, w3, b3, gamma, beta, w4, b4)


def _reference(x_nchw, params):
    """Pure-JAX reference with the same precision path as the kernel."""
    (w1, b1, w3, b3, gamma, beta, w4, b4) = params
    b = x_nchw.shape[0]
    x = x_nchw.reshape(b, IN_DIM).astype(jnp.bfloat16)
    h = jnp.maximum(jnp.dot(x, w1, preferred_element_type=jnp.float32) + b1, 0.0)
    h = jnp.maximum(jnp.dot(h.astype(jnp.bfloat16), w3,
                            preferred_element_type=jnp.float32) + b3, 0.0)
    mean = jnp.mean(h, axis=0, keepdims=True)
    var = jnp.mean(h * h, axis=0, keepdims=True) - mean * mean
    h = (h - mean) * lax.rsqrt(var + BN_EPS) * gamma + beta
    logits = jnp.maximum(jnp.dot(h.astype(jnp.bfloat16), w4,
                                 preferred_element_type=jnp.float32) + b4, 0.0)
    return jax.nn.log_softmax(logits[:, :OUT_DIM], axis=-1)


if __name__ == "__main__":
    key = jax.random.PRNGKey(0)
    k_x, k_p = jax.random.split(key)

    batch = 4
    x = jax.random.normal(k_x, (batch, 1, 28, 28), jnp.float32)  # NCHW like MNIST
    params = init_params(k_p)

    out = net_forward(x, params)
    out = jax.block_until_ready(out)

    ref = _reference(x, params)
    assert out.shape == (batch, OUT_DIM)
    assert bool(jnp.allclose(out, ref, atol=2e-3, rtol=2e-3)), "mismatch vs reference"

    print("KERNEL_OK")
</pallas_src>

<mosaic_0001>
module attributes {stable_mosaic.version = 11 : i64} {
  func.func @_net_kernel(%arg0: memref<1xi32, #tpu.memory_space<smem>>, %arg1: memref<8x784xbf16, #tpu.memory_space<vmem>>, %arg2: memref<784x512xbf16, #tpu.memory_space<vmem>>, %arg3: memref<1x512xf32, #tpu.memory_space<vmem>>, %arg4: memref<512x512xbf16, #tpu.memory_space<vmem>>, %arg5: memref<1x512xf32, #tpu.memory_space<vmem>>, %arg6: memref<1x512xf32, #tpu.memory_space<vmem>>, %arg7: memref<1x512xf32, #tpu.memory_space<vmem>>, %arg8: memref<512x128xbf16, #tpu.memory_space<vmem>>, %arg9: memref<1x128xf32, #tpu.memory_space<vmem>>, %arg10: memref<8x128xf32, #tpu.memory_space<vmem>>) attributes {dimension_semantics = [], scalar_prefetch = 0 : i64, scratch_operands = 0 : i64, tpu.core_type = #tpu.core_type<tc>} {
    %c0 = arith.constant 0 : index
    %0 = memref.load %arg0[%c0] : memref<1xi32, #tpu.memory_space<smem>>
    %1 = arith.sitofp %0 : i32 to f32
    %cst = arith.constant 1.000000e+00 : f32
    %2 = arith.divf %cst, %1 : f32
    %3 = tpu.iota {dimensions = array<i32: 0>} : vector<8x1xi32>
    %4 = vector.broadcast %0 : i32 to vector<8x1xi32>
    %5 = arith.cmpi slt, %3, %4 : vector<8x1xi32>
    %6 = arith.extui %5 : vector<8x1xi1> to vector<8x1xi32>
    %7 = arith.sitofp %6 : vector<8x1xi32> to vector<8x1xf32>
    %c0_0 = arith.constant 0 : index
    %c0_1 = arith.constant 0 : index
    %8 = vector.load %arg1[%c0_0, %c0_1] : memref<8x784xbf16, #tpu.memory_space<vmem>>, vector<8x784xbf16>
    %c0_2 = arith.constant 0 : index
    %c0_3 = arith.constant 0 : index
    %9 = vector.load %arg2[%c0_2, %c0_3] : memref<784x512xbf16, #tpu.memory_space<vmem>>, vector<784x512xbf16>
    %cst_4 = arith.constant dense<0.000000e+00> : vector<8x512xf32>
    %10 = tpu.matmul %8, %9, %cst_4 {dimension_numbers = #tpu.dot_dimension_numbers<[1], [0], [0], [1], [0, 0, 1, 1], [], []>} : vector<8x784xbf16>, vector<784x512xbf16>, vector<8x512xf32> -> vector<8x512xf32>
    %c0_5 = arith.constant 0 : index
    %c0_6 = arith.constant 0 : index
    %11 = vector.load %arg3[%c0_5, %c0_6] : memref<1x512xf32, #tpu.memory_space<vmem>>, vector<1x512xf32>
    %12 = vector.broadcast %11 : vector<1x512xf32> to vector<8x512xf32>
    %13 = arith.addf %10, %12 : vector<8x512xf32>
    %cst_7 = arith.constant 0.000000e+00 : f32
    %14 = vector.broadcast %cst_7 : f32 to vector<8x512xf32>
    %15 = arith.maximumf %13, %14 : vector<8x512xf32>
    %16 = arith.truncf %15 : vector<8x512xf32> to vector<8x512xbf16>
    %c0_8 = arith.constant 0 : index
    %c0_9 = arith.constant 0 : index
    %17 = vector.load %arg4[%c0_8, %c0_9] : memref<512x512xbf16, #tpu.memory_space<vmem>>, vector<512x512xbf16>
    %cst_10 = arith.constant dense<0.000000e+00> : vector<8x512xf32>
    %18 = tpu.matmul %16, %17, %cst_10 {dimension_numbers = #tpu.dot_dimension_numbers<[1], [0], [0], [1], [0, 0, 1, 1], [], []>} : vector<8x512xbf16>, vector<512x512xbf16>, vector<8x512xf32> -> vector<8x512xf32>
    %c0_11 = arith.constant 0 : index
    %c0_12 = arith.constant 0 : index
    %19 = vector.load %arg5[%c0_11, %c0_12] : memref<1x512xf32, #tpu.memory_space<vmem>>, vector<1x512xf32>
    %20 = vector.broadcast %19 : vector<1x512xf32> to vector<8x512xf32>
    %21 = arith.addf %18, %20 : vector<8x512xf32>
    %cst_13 = arith.constant 0.000000e+00 : f32
    %22 = vector.broadcast %cst_13 : f32 to vector<8x512xf32>
    %23 = arith.maximumf %21, %22 : vector<8x512xf32>
    %24 = vector.broadcast %7 : vector<8x1xf32> to vector<8x512xf32>
    %25 = arith.mulf %23, %24 : vector<8x512xf32>
    %cst_14 = arith.constant dense<0.000000e+00> : vector<512xf32>
    %26 = vector.multi_reduction <add>, %25, %cst_14 [0] : vector<8x512xf32> to vector<512xf32>
    %27 = vector.shape_cast %26 : vector<512xf32> to vector<1x512xf32>
    %28 = arith.mulf %25, %23 : vector<8x512xf32>
    %cst_15 = arith.constant dense<0.000000e+00> : vector<512xf32>
    %29 = vector.multi_reduction <add>, %28, %cst_15 [0] : vector<8x512xf32> to vector<512xf32>
    %30 = vector.shape_cast %29 : vector<512xf32> to vector<1x512xf32>
    %31 = vector.broadcast %2 : f32 to vector<1x512xf32>
    %32 = arith.mulf %27, %31 : vector<1x512xf32>
    %33 = vector.broadcast %2 : f32 to vector<1x512xf32>
    %34 = arith.mulf %30, %33 : vector<1x512xf32>
    %35 = arith.mulf %32, %32 : vector<1x512xf32>
    %36 = arith.subf %34, %35 : vector<1x512xf32>
    %37 = vector.broadcast %32 : vector<1x512xf32> to vector<8x512xf32>
    %38 = arith.subf %23, %37 : vector<8x512xf32>
    %cst_16 = arith.constant 9.99999974E-6 : f32
    %39 = vector.broadcast %cst_16 : f32 to vector<1x512xf32>
    %40 = arith.addf %36, %39 : vector<1x512xf32>
    %41 = math.rsqrt %40 : vector<1x512xf32>
    %42 = vector.broadcast %41 : vector<1x512xf32> to vector<8x512xf32>
    %43 = arith.mulf %38, %42 : vector<8x512xf32>
    %c0_17 = arith.constant 0 : index
    %c0_18 = arith.constant 0 : index
    %44 = vector.load %arg6[%c0_17, %c0_18] : memref<1x512xf32, #tpu.memory_space<vmem>>, vector<1x512xf32>
    %45 = vector.broadcast %44 : vector<1x512xf32> to vector<8x512xf32>
    %46 = arith.mulf %43, %45 : vector<8x512xf32>
    %c0_19 = arith.constant 0 : index
    %c0_20 = arith.constant 0 : index
    %47 = vector.load %arg7[%c0_19, %c0_20] : memref<1x512xf32, #tpu.memory_space<vmem>>, vector<1x512xf32>
    %48 = vector.broadcast %47 : vector<1x512xf32> to vector<8x512xf32>
    %49 = arith.addf %46, %48 : vector<8x512xf32>
    %50 = arith.truncf %49 : vector<8x512xf32> to vector<8x512xbf16>
    %c0_21 = arith.constant 0 : index
    %c0_22 = arith.constant 0 : index
    %51 = vector.load %arg8[%c0_21, %c0_22] : memref<512x128xbf16, #tpu.memory_space<vmem>>, vector<512x128xbf16>
    %cst_23 = arith.constant dense<0.000000e+00> : vector<8x128xf32>
    %52 = tpu.matmul %50, %51, %cst_23 {dimension_numbers = #tpu.dot_dimension_numbers<[1], [0], [0], [1], [0, 0, 1, 1], [], []>} : vector<8x512xbf16>, vector<512x128xbf16>, vector<8x128xf32> -> vector<8x128xf32>
    %c0_24 = arith.constant 0 : index
    %c0_25 = arith.constant 0 : index
    %53 = vector.load %arg9[%c0_24, %c0_25] : memref<1x128xf32, #tpu.memory_space<vmem>>, vector<1x128xf32>
    %54 = vector.broadcast %53 : vector<1x128xf32> to vector<8x128xf32>
    %55 = arith.addf %52, %54 : vector<8x128xf32>
    %cst_26 = arith.constant 0.000000e+00 : f32
    %56 = vector.broadcast %cst_26 : f32 to vector<8x128xf32>
    %57 = arith.maximumf %55, %56 : vector<8x128xf32>
    %58 = tpu.iota {dimensions = array<i32: 1>} : vector<8x128xi32>
    %c10_i32 = arith.constant 10 : i32
    %59 = vector.broadcast %c10_i32 : i32 to vector<8x128xi32>
    %60 = arith.cmpi slt, %58, %59 : vector<8x128xi32>
    %cst_27 = arith.constant -1.000000e+30 : f32
    %61 = vector.broadcast %cst_27 : f32 to vector<8x128xf32>
    %62 = arith.select %60, %57, %61 : vector<8x128xi1>, vector<8x128xf32>
    %cst_28 = arith.constant dense<0xFF800000> : vector<8xf32>
    %63 = vector.multi_reduction <maximumf>, %62, %cst_28 [1] : vector<8x128xf32> to vector<8xf32>
    %64 = vector.shape_cast %63 : vector<8xf32> to vector<8x1xf32>
    %65 = vector.broadcast %64 : vector<8x1xf32> to vector<8x128xf32>
    %66 = arith.subf %62, %65 : vector<8x128xf32>
    %67 = math.exp %66 : vector<8x128xf32>
    %cst_29 = arith.constant dense<0.000000e+00> : vector<8xf32>
    %68 = vector.multi_reduction <add>, %67, %cst_29 [1] : vector<8x128xf32> to vector<8xf32>
    %69 = vector.shape_cast %68 : vector<8xf32> to vector<8x1xf32>
    %70 = math.log %69 : vector<8x1xf32>
    %71 = vector.broadcast %70 : vector<8x1xf32> to vector<8x128xf32>
    %72 = arith.subf %66, %71 : vector<8x128xf32>
    %c0_30 = arith.constant 0 : index
    %c0_31 = arith.constant 0 : index
    %73 = vector.load %arg10[%c0_30, %c0_31] : memref<8x128xf32, #tpu.memory_space<vmem>>, vector<8x128xf32>
    tpu.vector_store %arg10[%c0_30, %c0_31], %72 {strides = array<i32>} : memref<8x128xf32, #tpu.memory_space<vmem>>, vector<8x128xf32>,
    return
  }
}

</mosaic_0001>

<bundles_post_ra>
// kernel: net_forward.1
= control target key start
LH: loop header
LB: loop body
LE: loop exit
PB: predicated region body
PF: predicated region fallthrough
CT: control target
= control target key end

     0   :  { %16 = vsyncpa [#allocation4], 0  ;;  %s5416_s0 = inlined_call_operand.<no memory space> [shape: s32[1], index: 0, kind: input, shape index: {}]   ;;  %s5417_s1 = inlined_call_operand.vmem [shape: bf16[8,784], index: 1, kind: input, shape index: {}]   ;;  %s5418_s2 = inlined_call_operand.hbm [shape: bf16[784,512], index: 2, kind: input, shape index: {}]   ;;  %s5419_s3 = inlined_call_operand.vmem [shape: f32[1,512], index: 3, kind: input, shape index: {}]   ;;  %s5420_s4 = inlined_call_operand.hbm [shape: bf16[512,512], index: 4, kind: input, shape index: {}]   ;;  %s5421_s5 = inlined_call_operand.vmem [shape: f32[1,512], index: 5, kind: input, shape index: {}]   ;;  %s5422_s6 = inlined_call_operand.vmem [shape: f32[1,512], index: 6, kind: input, shape index: {}]   ;;  %s5423_s7 = inlined_call_operand.vmem [shape: f32[1,512], index: 7, kind: input, shape index: {}]   ;;  %s5424_s8 = inlined_call_operand.vmem [shape: bf16[512,128], index: 8, kind: input, shape index: {}]   ;;  %s5425_s9 = inlined_call_operand.vmem [shape: f32[1,128], index: 9, kind: input, shape index: {}]   ;;  %s5426_s10 = inlined_call_operand.vmem [shape: f32[8,128], index: 10, kind: output, shape index: {}]  }
   0x1   :  { %s26_s15 = sshll.u32 %s5418_s2, 4  ;;  %s27_s15 = int_to_ptr.hbm [resolvable:$true] %s26_s15 }
   0x2   :  { %17 = vsyncpa [#allocation6], 0  ;;  %s5023_s16 = smov [#allocation3]   ;;  %s41_s20 = sshll.u32 %s5420_s4, 4  ;;  %s42_s20 = int_to_ptr.hbm [resolvable:$true] %s41_s20 }
   0x3   :  { %s28_s17 = sshll.u32 %s5023_s16, 4  ;;  %s5024_s21 = smov 256   ;;  %s29_s17 = int_to_ptr.vmem [resolvable:$true] %s28_s17 }
   0x4   :  { %s5025_s22 = smov 16   ;;  %s5026_s23 = smov [#allocation5]  }
   0x5   :  { %34 = dma.hbm_to_vmem [thread:$0]  %s27_s15, 25088, %s29_s17, [#allocation4], %s5024_s21, %s5024_s21, %s5025_s22  }
   0x6   :  { %s43_s24 = sshll.u32 %s5026_s23, 4  ;;  %s44_s24 = int_to_ptr.vmem [resolvable:$true] %s43_s24 }
   0x7   :  { %49 = dma.hbm_to_vmem [thread:$0]  %s42_s20, 16384, %s44_s24, [#allocation6], %s5024_s21, %s5024_s21, %s5025_s22  }
   0x8   :  { %5019 = dma.done.wait [#allocation4], 25088  }
   0x9   :  { %5020 = vsyncadd [#allocation4], 4294942208 }
   0xa   :  { %5021 = dma.done.wait [#allocation6], 16384  }
   0xb   :  { %5022 = vsyncadd [#allocation6], 4294950912  ;;  %v3279_v0 = vld [vmem:[#allocation3 + $0xe0] sm:$0xf]  ;;  %v4623_v1 = vld [vmem:[#allocation3 + $0xec] sm:$0xf0]  ;;  %s70_s15 = scvt.s32.f32 %s5416_s0 }
   0xc   :  { %v3407_v2 = vld [vmem:[#allocation3 + $0x1e0] sm:$0xf]  ;;  %v3280_v3 = vor.u32 %v4623_v1, %v3279_v0  ;;  %v4655_v4 = vld [vmem:[#allocation3 + $0x1ec] sm:$0xf0]  ;;  %vm1307_vm0 = vcmask 130048  }
   0xd   :  { %v3535_v5 = vld [vmem:[#allocation3 + $0x2e0] sm:$0xf]  ;;  %v4687_v6 = vld [vmem:[#allocation3 + $0x2ec] sm:$0xf0]  ;;  %v3408_v7 = vor.u32 %v4655_v4, %v3407_v2 }
   0xe   :  { %v3536_v8 = vor.u32 %v4687_v6, %v3535_v5  ;;  %v3663_v9 = vld [vmem:[#allocation3 + $0x3e0] sm:$0xf]  ;;  %v4719_v10 = vld [vmem:[#allocation3 + $0x3ec] sm:$0xf0]  ;;  %1311 = vmatpush.bf16.msra.mxu0 %v3280_v3 }
   0xf   :  { %v3263_v11 = vld [vmem:[#allocation3 + $0xc0] sm:$0xf]  ;;  %v3664_v12 = vor.u32 %v4719_v10, %v3663_v9  ;;  %v4619_v13 = vld [vmem:[#allocation3 + $0xcc] sm:$0xf0]  ;;  %1324 = vmatpush.bf16.msra.mxu1 %v3408_v7 }
  0x10   :  { %v3391_v14 = vld [vmem:[#allocation3 + $0x1c0] sm:$0xf]  ;;  %v4651_v15 = vld [vmem:[#allocation3 + $0x1cc] sm:$0xf0]  ;;  %1337 = vmatpush.bf16.msra.mxu2 %v3536_v8  ;;  %v3264_v16 = vor.u32 %v4619_v13, %v3263_v11 }
  0x11   :  { %v3392_v17 = vor.u32 %v4651_v15, %v3391_v14  ;;  %v3519_v18 = vld [vmem:[#allocation3 + $0x2c0] sm:$0xf]  ;;  %v4683_v19 = vld [vmem:[#allocation3 + $0x2cc] sm:$0xf0]  ;;  %1350 = vmatpush.bf16.msra.mxu3 %v3664_v12 }
  0x12   :  { %v3647_v20 = vld [vmem:[#allocation3 + $0x3c0] sm:$0xf]  ;;  %v3520_v21 = vor.u32 %v4683_v19, %v3519_v18  ;;  %v4715_v22 = vld [vmem:[#allocation3 + $0x3cc] sm:$0xf0]  ;;  %1312 = vmatpush.bf16.msra.mxu0 %v3264_v16 }
  0x13   :  { %v3247_v23 = vld [vmem:[#allocation3 + $0xa0] sm:$0xf]  ;;  %v4615_v24 = vld [vmem:[#allocation3 + $0xac] sm:$0xf0]  ;;  %v3648_v25 = vor.u32 %v4715_v22, %v3647_v20  ;;  %1325 = vmatpush.bf16.msra.mxu1 %v3392_v17 }
  0x14   :  { %v3375_v26 = vld [vmem:[#allocation3 + $0x1a0] sm:$0xf]  ;;  %v4647_v27 = vld [vmem:[#allocation3 + $0x1ac] sm:$0xf0]  ;;  %v3248_v29 = vor.u32 %v4615_v24, %v3247_v23  ;;  %1338 = vmatpush.bf16.msra.mxu2 %v3520_v21 }
  0x15   :  { %v3503_v28 = vld [vmem:[#allocation3 + $0x2a0] sm:$0xf]  ;;  %v4679_v30 = vld [vmem:[#allocation3 + $0x2ac] sm:$0xf0]  ;;  %v3376_v33 = vor.u32 %v4647_v27, %v3375_v26  ;;  %1351 = vmatpush.bf16.msra.mxu3 %v3648_v25  ;;  %v94_v25 = vld [vmem:[%s5417_s1 + $0x8] sm:$0xff] }
  0x16   :  { %v3631_v31 = vld [vmem:[#allocation3 + $0x3a0] sm:$0xf]  ;;  %v4711_v32 = vld [vmem:[#allocation3 + $0x3ac] sm:$0xf0]  ;;  %v3504_v34 = vor.u32 %v4679_v30, %v3503_v28  ;;  %1313 = vmatpush.bf16.msra.mxu0 %v3248_v29 }
  0x17   :  { %v3231_v35 = vld [vmem:[#allocation3 + $0x80] sm:$0xf]  ;;  %v4611_v36 = vld [vmem:[#allocation3 + $0x8c] sm:$0xf0]  ;;  %v3632_v38 = vor.u32 %v4711_v32, %v3631_v31  ;;  %1326 = vmatpush.bf16.msra.mxu1 %v3376_v33 }
  0x18   :  { %v3359_v37 = vld [vmem:[#allocation3 + $0x180] sm:$0xf]  ;;  %v4643_v39 = vld [vmem:[#allocation3 + $0x18c] sm:$0xf0]  ;;  %v3232_v44 = vor.u32 %v4611_v36, %v3231_v35  ;;  %1339 = vmatpush.bf16.msra.mxu2 %v3504_v34  ;;  %v4621_v34 = vld [vmem:[#allocation3 + $0xe4] sm:$0xf]  ;;  %v309_v36 = vunpack.c.l.b16 %v94_v25 }
  0x19   :  { %v3487_v40 = vld [vmem:[#allocation3 + $0x280] sm:$0xf]  ;;  %v4675_v41 = vld [vmem:[#allocation3 + $0x28c] sm:$0xf0]  ;;  %v3360_v45 = vor.u32 %v4643_v39, %v3359_v37  ;;  %1352 = vmatpush.bf16.msra.mxu3 %v3632_v38  ;;  %v3281_v35 = vld [vmem:[#allocation3 + $0xf0] sm:$0xf0] }
  0x1a   :  { %v3615_v42 = vld [vmem:[#allocation3 + $0x380] sm:$0xf]  ;;  %v4707_v43 = vld [vmem:[#allocation3 + $0x38c] sm:$0xf0]  ;;  %v3488_v46 = vor.u32 %v4675_v41, %v3487_v40  ;;  %1314 = vmatpush.bf16.msra.mxu0 %v3232_v44 }
  0x1b   :  { %v3215_v47 = vld [vmem:[#allocation3 + $0x60] sm:$0xf]  ;;  %v4607_v48 = vld [vmem:[#allocation3 + $0x6c] sm:$0xf0]  ;;  %v3616_v50 = vor.u32 %v4707_v43, %v3615_v42  ;;  %1327 = vmatpush.bf16.msra.mxu1 %v3360_v45  ;;  %v310_v42 = vunpack.c.h.b16 %v94_v25  ;;  %v4641_v25 = vld [vmem:[#allocation3 + $0x184] sm:$0xf] }
  0x1c   :  { %v3343_v49 = vld [vmem:[#allocation3 + $0x160] sm:$0xf]  ;;  %v4639_v51 = vld [vmem:[#allocation3 + $0x16c] sm:$0xf0]  ;;  %v3216_v56 = vor.u32 %v4607_v48, %v3215_v47  ;;  %1340 = vmatpush.bf16.msra.mxu2 %v3488_v46  ;;  %v4653_v46 = vld [vmem:[#allocation3 + $0x1e4] sm:$0xf] }
  0x1d   :  { %v3471_v52 = vld [vmem:[#allocation3 + $0x260] sm:$0xf]  ;;  %v4671_v53 = vld [vmem:[#allocation3 + $0x26c] sm:$0xf0]  ;;  %v3344_v57 = vor.u32 %v4639_v51, %v3343_v49  ;;  %1353 = vmatpush.bf16.msra.mxu3 %v3616_v50  ;;  %v3409_v47 = vld [vmem:[#allocation3 + $0x1f0] sm:$0xf0]  ;;  %v3284_v49 = vor.u32 %v4621_v34, %v3281_v35 }
  0x1e   :  { %v3599_v54 = vld [vmem:[#allocation3 + $0x360] sm:$0xf]  ;;  %v4703_v55 = vld [vmem:[#allocation3 + $0x36c] sm:$0xf0]  ;;  %v3472_v58 = vor.u32 %v4671_v53, %v3471_v52  ;;  %1315 = vmatpush.bf16.msra.mxu0 %v3216_v56  ;;  %v5095_v53 = vpack.c.b16 %v309_v36, %v309_v36  ;;  %v3265_v56 = vld [vmem:[#allocation3 + $0xd0] sm:$0xf0] }
  0x1f   :  { %v3199_v59 = vld [vmem:[#allocation3 + $0x40] sm:$0xf]  ;;  %v4603_v60 = vld [vmem:[#allocation3 + $0x4c] sm:$0xf0]  ;;  %v3600_v62 = vor.u32 %v4703_v55, %v3599_v54  ;;  %1328 = vmatpush.bf16.msra.mxu1 %v3344_v57  ;;  %v4617_v55 = vld [vmem:[#allocation3 + $0xc4] sm:$0xf] }
  0x20   :  { %v3327_v61 = vld [vmem:[#allocation3 + $0x140] sm:$0xf]  ;;  %v4635_v63 = vld [vmem:[#allocation3 + $0x14c] sm:$0xf0]  ;;  %v3200_v4 = vor.u32 %v4603_v60, %v3199_v59  ;;  %1341 = vmatpush.bf16.msra.mxu2 %v3472_v58  ;;  %v5099_v60 = vpack.c.b16 %v310_v42, %v310_v42  ;;  %v3217_v34 = vld [vmem:[#allocation3 + $0x70] sm:$0xf0] }
  0x21   :  { %v3455_v0 = vld [vmem:[#allocation3 + $0x240] sm:$0xf]  ;;  %v4667_v1 = vld [vmem:[#allocation3 + $0x24c] sm:$0xf0]  ;;  %v3328_v5 = vor.u32 %v4635_v63, %v3327_v61  ;;  %1354 = vmatpush.bf16.msra.mxu3 %v3600_v62  ;;  %v3412_v61 = vor.u32 %v4653_v46, %v3409_v47  ;;  %v4649_v63 = vld [vmem:[#allocation3 + $0x1c4] sm:$0xf] }
  0x22   :  { %v3583_v2 = vld [vmem:[#allocation3 + $0x340] sm:$0xf]  ;;  %v4699_v3 = vld [vmem:[#allocation3 + $0x34c] sm:$0xf0]  ;;  %v3456_v6 = vor.u32 %v4667_v1, %v3455_v0  ;;  %1316 = vmatpush.bf16.msra.mxu0 %v3200_v4  ;;  %v3393_v0 = vld [vmem:[#allocation3 + $0x1d0] sm:$0xf0] }
  0x23   :  { %v3183_v7 = vld [vmem:[#allocation3 + $0x20] sm:$0xf]  ;;  %v4599_v8 = vld [vmem:[#allocation3 + $0x2c] sm:$0xf0]  ;;  %v3584_v10 = vor.u32 %v4699_v3, %v3583_v2  ;;  %1329 = vmatpush.bf16.msra.mxu1 %v3328_v5  ;;  %v3268_v2 = vor.u32 %v4617_v55, %v3265_v56  ;;  %v4601_v46 = vld [vmem:[#allocation3 + $0x44] sm:$0xf] }
  0x24   :  { %v3311_v9 = vld [vmem:[#allocation3 + $0x120] sm:$0xf]  ;;  %v4631_v11 = vld [vmem:[#allocation3 + $0x12c] sm:$0xf0]  ;;  %v3184_v17 = vor.u32 %v4599_v8, %v3183_v7  ;;  %1342 = vmatpush.bf16.msra.mxu2 %v3456_v6  ;;  %v4613_v7 = vld [vmem:[#allocation3 + $0xa4] sm:$0xf] }
  0x25   :  { %v3439_v12 = vld [vmem:[#allocation3 + $0x220] sm:$0xf]  ;;  %v4663_v13 = vld [vmem:[#allocation3 + $0x22c] sm:$0xf0]  ;;  %v3312_v21 = vor.u32 %v4631_v11, %v3311_v9  ;;  %1355 = vmatpush.bf16.msra.mxu3 %v3584_v10  ;;  %v3249_v8 = vld [vmem:[#allocation3 + $0xb0] sm:$0xf0]  ;;  %v3396_v10 = vor.u32 %v4649_v63, %v3393_v0 }
  0x26   :  { %v3567_v14 = vld [vmem:[#allocation3 + $0x320] sm:$0xf]  ;;  %v4695_v15 = vld [vmem:[#allocation3 + $0x32c] sm:$0xf0]  ;;  %v3440_v22 = vor.u32 %v4663_v13, %v3439_v12  ;;  %1317 = vmatpush.bf16.msra.mxu0 %v3184_v17  ;;  %v4645_v12 = vld [vmem:[#allocation3 + $0x1a4] sm:$0xf] }
  0x27   :  { %v3167_v16 = vld [vmem:[#allocation3] sm:$0xf]  ;;  %v4595_v18 = vld [vmem:[#allocation3 + $0xc] sm:$0xf0]  ;;  %v3568_v26 = vor.u32 %v4695_v15, %v3567_v14  ;;  %1330 = vmatpush.bf16.msra.mxu1 %v3312_v21  ;;  %v3377_v13 = vld [vmem:[#allocation3 + $0x1b0] sm:$0xf0]  ;;  %v3252_v15 = vor.u32 %v4613_v7, %v3249_v8 }
  0x28   :  { %v3295_v19 = vld [vmem:[#allocation3 + $0x100] sm:$0xf]  ;;  %v4627_v20 = vld [vmem:[#allocation3 + $0x10c] sm:$0xf0]  ;;  %v3168_v33 = vor.u32 %v4595_v18, %v3167_v16  ;;  %1343 = vmatpush.bf16.msra.mxu2 %v3440_v22  ;;  %v3233_v21 = vld [vmem:[#allocation3 + $0x90] sm:$0xf0] }
  0x29   :  { %v3423_v23 = vld [vmem:[#allocation3 + $0x200] sm:$0xf]  ;;  %v4659_v24 = vld [vmem:[#allocation3 + $0x20c] sm:$0xf0]  ;;  %v3296_v38 = vor.u32 %v4627_v20, %v3295_v19  ;;  %1356 = vmatpush.bf16.msra.mxu3 %v3568_v26  ;;  %v4609_v20 = vld [vmem:[#allocation3 + $0x84] sm:$0xf] }
  0x2a   :  { %v3551_v27 = vld [vmem:[#allocation3 + $0x300] sm:$0xf]  ;;  %v4691_v28 = vld [vmem:[#allocation3 + $0x30c] sm:$0xf0]  ;;  %v3424_v39 = vor.u32 %v4659_v24, %v3423_v23  ;;  %1318 = vmatpush.bf16.msra.mxu0 %v3168_v33  ;;  %v96_v22 = vld [vmem:[%s5417_s1 + $0x18] sm:$0xf]  ;;  %v3380_v23 = vor.u32 %v4645_v12, %v3377_v13 }
  0x2b   :  { %v3791_v29 = vld [vmem:[#allocation3 + $0x4e0] sm:$0xf]  ;;  %v4751_v30 = vld [vmem:[#allocation3 + $0x4ec] sm:$0xf0]  ;;  %v3552_v43 = vor.u32 %v4691_v28, %v3551_v27  ;;  %1331 = vmatpush.bf16.msra.mxu1 %v3296_v38  ;;  %v3361_v26 = vld [vmem:[#allocation3 + $0x190] sm:$0xf0]  ;;  %v3236_v28 = vor.u32 %v4609_v20, %v3233_v21  ;;  %v313_v35 = vunpack.c.l.b16 %v96_v22 }
  0x2c   :  { %v3919_v31 = vld [vmem:[#allocation3 + $0x5e0] sm:$0xf]  ;;  %v4783_v32 = vld [vmem:[#allocation3 + $0x5ec] sm:$0xf0]  ;;  %v3792_v44 = vor.u32 %v4751_v30, %v3791_v29  ;;  %1344 = vmatpush.bf16.msra.mxu2 %v3424_v39  ;;  %v4605_v33 = vld [vmem:[#allocation3 + $0x64] sm:$0xf]  ;;  %v3364_v36 = vor.u32 %v4641_v25, %v3361_v26 }
  0x2d   :  { %v93_v37 = vld [vmem:[%s5417_s1] sm:$0xff]  ;;  %v4787_v45 = vld [vmem:[#allocation3 + $0x60c] sm:$0xf0]  ;;  %v3920_v48 = vor.u32 %v4783_v32, %v3919_v31  ;;  %1357 = vmatpush.bf16.msra.mxu3 %v3552_v43  ;;  %v3345_v39 = vld [vmem:[#allocation3 + $0x170] sm:$0xf0] }
  0x2e   :  { %v3935_v40 = vld [vmem:[#allocation3 + $0x600] sm:$0xf]  ;;  %v307_v41 = vunpack.c.l.b16 %v93_v37  ;;  %v4747_v51 = vld [vmem:[#allocation3 + $0x4cc] sm:$0xf0]  ;;  %v308_v58 = vunpack.c.h.b16 %v93_v37  ;;  %1363 = vmatpush.bf16.msrb.mxu0 %v3792_v44  ;;  %v4637_v38 = vld [vmem:[#allocation3 + $0x164] sm:$0xf] }
  0x2f   :  { %v3775_v50 = vld [vmem:[#allocation3 + $0x4c0] sm:$0xf]  ;;  %v4779_v54 = vld [vmem:[#allocation3 + $0x5cc] sm:$0xf0]  ;;  %v3936_v59 = vor.u32 %v4787_v45, %v3935_v40  ;;  %1376 = vmatpush.bf16.msrb.mxu1 %v3920_v48  ;;  %1345 = vmatmul.bf16.vlgmr.msra.gmra.mxu2 %v5095_v53  ;;  %v3201_v47 = vld [vmem:[#allocation3 + $0x50] sm:$0xf0]  ;;  %v5110_v48 = vpack.c.b16 %v313_v35, %v313_v35 }
  0x30   :  { %v3903_v52 = vld [vmem:[#allocation3 + $0x5c0] sm:$0xf]  ;;  %v5097_v57 = vpack.c.b16 %v307_v41, %v307_v41  ;;  %v3776_v62 = vor.u32 %v4747_v51, %v3775_v50  ;;  %v4743_v4 = vld [vmem:[#allocation3 + $0x4ac] sm:$0xf0]  ;;  %v5103_v9 = vpack.c.b16 %v308_v58, %v308_v58  ;;  %1358 = vmatmul.bf16.vlgmr.msra.gmra.mxu3 %v5099_v60  ;;  %v3220_v41 = vor.u32 %v4605_v33, %v3217_v34  ;;  %v4633_v51 = vld [vmem:[#allocation3 + $0x144] sm:$0xf] }
  0x31   :  { %1402 = vmatpush.bf16.msrb.mxu3 %v3284_v49  ;;  %v3904_v1 = vor.u32 %v4779_v54, %v3903_v52  ;;  %v3759_v3 = vld [vmem:[#allocation3 + $0x4a0] sm:$0xf]  ;;  %v4775_v6 = vld [vmem:[#allocation3 + $0x5ac] sm:$0xf0]  ;;  %1396 = vmatpush.bf16.msrb.mxu2 %v3936_v59  ;;  %v3348_v49 = vor.u32 %v4637_v38, %v3345_v39  ;;  %v3329_v52 = vld [vmem:[#allocation3 + $0x150] sm:$0xf0]  ;;  %v3204_v55 = vor.u32 %v4601_v46, %v3201_v47 }
  0x32   :  { %v3887_v5 = vld [vmem:[#allocation3 + $0x5a0] sm:$0xf]  ;;  %1319 = vmatmul.bf16.vlgmr.msra.gmra.mxu0 %v5097_v57  ;;  %v3760_v11 = vor.u32 %v4743_v4, %v3759_v3  ;;  %v4739_v17 = vld [vmem:[#allocation3 + $0x48c] sm:$0xf0]  ;;  %1332 = vmatmul.bf16.vlgmr.msra.gmra.mxu1 %v5103_v9  ;;  %v3185_v63 = vld [vmem:[#allocation3 + $0x30] sm:$0xf0] }
  0x33   :  { %1364 = vmatpush.bf16.msrb.mxu0 %v3776_v62  ;;  %1377 = vmatpush.bf16.msrb.mxu1 %v3904_v1  ;;  %v3888_v14 = vor.u32 %v4775_v6, %v3887_v5  ;;  %v3743_v16 = vld [vmem:[#allocation3 + $0x480] sm:$0xf]  ;;  %v4771_v19 = vld [vmem:[#allocation3 + $0x58c] sm:$0xf0]  ;;  %v4597_v62 = vld [vmem:[#allocation3 + $0x24] sm:$0xf]  ;;  %v3332_v1 = vor.u32 %v4633_v51, %v3329_v52 }
  0x34   :  { %v3871_v18 = vld [vmem:[#allocation3 + $0x580] sm:$0xf]  ;;  %v3744_v24 = vor.u32 %v4739_v17, %v3743_v16  ;;  %v4735_v30 = vld [vmem:[#allocation3 + $0x46c] sm:$0xf0]  ;;  %v4629_v0 = vld [vmem:[#allocation3 + $0x124] sm:$0xf]  ;;  %v3188_v7 = vor.u32 %v4597_v62, %v3185_v63 }
  0x35   :  { %1415 = vmatpush.bf16.msra.mxu2 %v3412_v61  ;;  %1403 = vmatpush.bf16.msrb.mxu3 %v3268_v2  ;;  %v3872_v27 = vor.u32 %v4771_v19, %v3871_v18  ;;  %v3727_v29 = vld [vmem:[#allocation3 + $0x460] sm:$0xf]  ;;  %v4767_v32 = vld [vmem:[#allocation3 + $0x56c] sm:$0xf0]  ;;  %v3313_v3 = vld [vmem:[#allocation3 + $0x130] sm:$0xf0] }
  0x36   :  { %v3855_v31 = vld [vmem:[#allocation3 + $0x560] sm:$0xf]  ;;  %v3728_v37 = vor.u32 %v4735_v30, %v3727_v29  ;;  %v4731_v43 = vld [vmem:[#allocation3 + $0x44c] sm:$0xf0]  ;;  %v4593_v12 = vld [vmem:[#allocation3 + $0x4] sm:$0xf]  ;;  %v3316_v19 = vor.u32 %v4629_v0, %v3313_v3 }
  0x37   :  { %1365 = vmatpush.bf16.msrb.mxu0 %v3760_v11  ;;  %1378 = vmatpush.bf16.msrb.mxu1 %v3888_v14  ;;  %v3856_v40 = vor.u32 %v4767_v32, %v3855_v31  ;;  %v3711_v42 = vld [vmem:[#allocation3 + $0x440] sm:$0xf]  ;;  %v4763_v45 = vld [vmem:[#allocation3 + $0x54c] sm:$0xf0]  ;;  %v3169_v13 = vld [vmem:[#allocation3 + $0x10] sm:$0xf0] }
  0x38   :  { %v3839_v44 = vld [vmem:[#allocation3 + $0x540] sm:$0xf]  ;;  %v3712_v50 = vor.u32 %v4731_v43, %v3711_v42  ;;  %v4727_v58 = vld [vmem:[#allocation3 + $0x42c] sm:$0xf0]  ;;  %v4685_v14 = vld [vmem:[#allocation3 + $0x2e4] sm:$0xf]  ;;  %v3172_v25 = vor.u32 %v4593_v12, %v3169_v13 }
  0x39   :  { %1416 = vmatpush.bf16.msra.mxu2 %v3396_v10  ;;  %1404 = vmatpush.bf16.msrb.mxu3 %v3252_v15  ;;  %v3840_v54 = vor.u32 %v4763_v45, %v3839_v44  ;;  %v3695_v56 = vld [vmem:[#allocation3 + $0x420] sm:$0xf]  ;;  %v4759_v61 = vld [vmem:[#allocation3 + $0x52c] sm:$0xf0]  ;;  %v3537_v15 = vld [vmem:[#allocation3 + $0x2f0] sm:$0xf0] }
  0x3a   :  { %v3823_v59 = vld [vmem:[#allocation3 + $0x520] sm:$0xf]  ;;  %v3696_v2 = vor.u32 %v4727_v58, %v3695_v56  ;;  %v95_v5 = vld [vmem:[%s5417_s1 + $0x10] sm:$0xff]  ;;  %v4717_v16 = vld [vmem:[#allocation3 + $0x3e4] sm:$0xf] }
  0x3b   :  { %1366 = vmatpush.bf16.msrb.mxu0 %v3744_v24  ;;  %1379 = vmatpush.bf16.msrb.mxu1 %v3872_v27  ;;  %v3679_v4 = vld [vmem:[#allocation3 + $0x400] sm:$0xf]  ;;  %v3824_v6 = vor.u32 %v4759_v61, %v3823_v59  ;;  %v4723_v8 = vld [vmem:[#allocation3 + $0x40c] sm:$0xf0]  ;;  %v3665_v17 = vld [vmem:[#allocation3 + $0x3f0] sm:$0xf0]  ;;  %v311_v18 = vunpack.c.l.b16 %v95_v5 }
  0x3c   :  { %v3807_v10 = vld [vmem:[#allocation3 + $0x500] sm:$0xf]  ;;  %v4755_v11 = vld [vmem:[#allocation3 + $0x50c] sm:$0xf0]  ;;  %v3680_v20 = vor.u32 %v4723_v8, %v3679_v4  ;;  %v4749_v21 = vld [vmem:[#allocation3 + $0x4e4] sm:$0xf]  ;;  %v3668_v29 = vor.u32 %v4717_v16, %v3665_v17 }
  0x3d   :  { %1417 = vmatpush.bf16.msra.mxu2 %v3380_v23  ;;  %1405 = vmatpush.bf16.msrb.mxu3 %v3236_v28  ;;  %v3793_v22 = vld [vmem:[#allocation3 + $0x4f0] sm:$0xf0]  ;;  %v312_v23 = vunpack.c.h.b16 %v95_v5  ;;  %v3808_v24 = vor.u32 %v4755_v11, %v3807_v10  ;;  %v4625_v26 = vld [vmem:[#allocation3 + $0x104] sm:$0xf]  ;;  %v3540_v28 = vor.u32 %v4685_v14, %v3537_v15  ;;  %v5117_v34 = vpack.c.b16 %v311_v18, %v311_v18 }
  0x3e   :  { %v3297_v27 = vld [vmem:[#allocation3 + $0x110] sm:$0xf0]  ;;  %v4781_v30 = vld [vmem:[#allocation3 + $0x5e4] sm:$0xf]  ;;  %v3796_v33 = vor.u32 %v4749_v21, %v3793_v22 }
  0x3f   :  { %1367 = vmatpush.bf16.msrb.mxu0 %v3728_v37  ;;  %1380 = vmatpush.bf16.msrb.mxu1 %v3856_v40  ;;  %v3921_v31 = vld [vmem:[#allocation3 + $0x5f0] sm:$0xf0]  ;;  %v4681_v32 = vld [vmem:[#allocation3 + $0x2c4] sm:$0xf]  ;;  %v3300_v38 = vor.u32 %v4625_v26, %v3297_v27  ;;  %v5119_v39 = vpack.c.b16 %v312_v23, %v312_v23 }
  0x40   :  { %3949 = vmatmul.msk.bf16.vlgmr.msrb.gmra.mxu2 %vm1307_vm0, %v5110_v48  ;;  %v3521_v35 = vld [vmem:[#allocation3 + $0x2d0] sm:$0xf0]  ;;  %v4745_v40 = vld [vmem:[#allocation3 + $0x4c4] sm:$0xf]  ;;  %v3924_v42 = vor.u32 %v4781_v30, %v3921_v31 }
  0x41   :  { %1418 = vmatpush.bf16.msra.mxu2 %v3364_v36  ;;  %1406 = vmatpush.bf16.msrb.mxu3 %v3220_v41  ;;  %v4713_v36 = vld [vmem:[#allocation3 + $0x3c4] sm:$0xf]  ;;  %v3649_v37 = vld [vmem:[#allocation3 + $0x3d0] sm:$0xf0]  ;;  %v3524_v43 = vor.u32 %v4681_v32, %v3521_v35 }
  0x42   :  { %v3777_v41 = vld [vmem:[#allocation3 + $0x4d0] sm:$0xf0]  ;;  %v3652_v44 = vor.u32 %v4713_v36, %v3649_v37  ;;  %v4777_v45 = vld [vmem:[#allocation3 + $0x5c4] sm:$0xf] }
  0x43   :  { %1368 = vmatpush.bf16.msrb.mxu0 %v3712_v50  ;;  %1381 = vmatpush.bf16.msrb.mxu1 %v3840_v54  ;;  %v3905_v46 = vld [vmem:[#allocation3 + $0x5d0] sm:$0xf0]  ;;  %v4677_v47 = vld [vmem:[#allocation3 + $0x2a4] sm:$0xf] }
  0x44   :  { %v3505_v50 = vld [vmem:[#allocation3 + $0x2b0] sm:$0xf0]  ;;  %v4709_v51 = vld [vmem:[#allocation3 + $0x3a4] sm:$0xf]  ;;  %v3908_v56 = vor.u32 %v4777_v45, %v3905_v46 }
  0x45   :  { %1419 = vmatpush.bf16.msra.mxu2 %v3348_v49  ;;  %1407 = vmatpush.bf16.msrb.mxu3 %v3204_v55  ;;  %v3780_v49 = vor.u32 %v4745_v40, %v3777_v41  ;;  %v3633_v52 = vld [vmem:[#allocation3 + $0x3b0] sm:$0xf0]  ;;  %v4741_v54 = vld [vmem:[#allocation3 + $0x4a4] sm:$0xf]  ;;  %v3508_v58 = vor.u32 %v4677_v47, %v3505_v50 }
  0x46   :  { %v3761_v55 = vld [vmem:[#allocation3 + $0x4b0] sm:$0xf0]  ;;  %v3636_v59 = vor.u32 %v4709_v51, %v3633_v52  ;;  %v4773_v61 = vld [vmem:[#allocation3 + $0x5a4] sm:$0xf] }
  0x47   :  { %1369 = vmatpush.bf16.msrb.mxu0 %v3696_v2  ;;  %1382 = vmatpush.bf16.msrb.mxu1 %v3824_v6  ;;  %v3889_v62 = vld [vmem:[#allocation3 + $0x5b0] sm:$0xf0]  ;;  %v4673_v63 = vld [vmem:[#allocation3 + $0x284] sm:$0xf]  ;;  %v3764_v0 = vor.u32 %v4741_v54, %v3761_v55 }
  0x48   :  { %v4705_v2 = vld [vmem:[#allocation3 + $0x384] sm:$0xf]  ;;  %v3617_v3 = vld [vmem:[#allocation3 + $0x390] sm:$0xf0]  ;;  %v3892_v6 = vor.u32 %v4773_v61, %v3889_v62  ;;  %v3287_v61 = vld [vmem:[#allocation3 + $0xe8] sm:$0xf] }
  0x49   :  { %1420 = vmatpush.bf16.msra.mxu2 %v3332_v1  ;;  %1408 = vmatpush.bf16.msrb.mxu3 %v3188_v7  ;;  %v3489_v1 = vld [vmem:[#allocation3 + $0x290] sm:$0xf0]  ;;  %v4737_v4 = vld [vmem:[#allocation3 + $0x484] sm:$0xf]  ;;  %v3620_v8 = vor.u32 %v4705_v2, %v3617_v3  ;;  %v4624_v62 = vld [vmem:[#allocation3 + $0xf4] sm:$0xf0] }
  0x4a   :  { %v3745_v5 = vld [vmem:[#allocation3 + $0x490] sm:$0xf0]  ;;  %v3492_v7 = vor.u32 %v4673_v63, %v3489_v1  ;;  %v4769_v10 = vld [vmem:[#allocation3 + $0x584] sm:$0xf]  ;;  %v3543_v2 = vld [vmem:[#allocation3 + $0x2e8] sm:$0xf] }
  0x4b   :  { %1370 = vmatpush.bf16.msrb.mxu0 %v3680_v20  ;;  %1383 = vmatpush.bf16.msrb.mxu1 %v3808_v24  ;;  %v3873_v11 = vld [vmem:[#allocation3 + $0x590] sm:$0xf0]  ;;  %v4669_v12 = vld [vmem:[#allocation3 + $0x264] sm:$0xf]  ;;  %v3748_v13 = vor.u32 %v4737_v4, %v3745_v5  ;;  %v4688_v3 = vld [vmem:[#allocation3 + $0x2f4] sm:$0xf0] }
  0x4c   :  { %v3473_v14 = vld [vmem:[#allocation3 + $0x270] sm:$0xf0]  ;;  %v4701_v15 = vld [vmem:[#allocation3 + $0x364] sm:$0xf] }
  0x4d   :  { %1421 = vmatpush.bf16.msra.mxu2 %v3316_v19  ;;  %1409 = vmatpush.bf16.msrb.mxu3 %v3172_v25  ;;  %v3601_v16 = vld [vmem:[#allocation3 + $0x370] sm:$0xf0]  ;;  %v4733_v17 = vld [vmem:[#allocation3 + $0x464] sm:$0xf]  ;;  %v3876_v19 = vor.u32 %v4769_v10, %v3873_v11  ;;  %v3476_v20 = vor.u32 %v4669_v12, %v3473_v14  ;;  %v3288_v10 = vor.u32 %v4624_v62, %v3287_v61  ;;  %v3671_v11 = vld [vmem:[#allocation3 + $0x3e8] sm:$0xf] }
  0x4e   :  { %1371 = vmatmul.bf16.vlgmr.msrb.gmra.mxu0 %v5117_v34  ;;  %1384 = vmatmul.bf16.vlgmr.msrb.gmra.mxu1 %v5119_v39  ;;  %v3729_v18 = vld [vmem:[#allocation3 + $0x470] sm:$0xf0]  ;;  %v3604_v21 = vor.u32 %v4701_v15, %v3601_v16  ;;  %v4765_v22 = vld [vmem:[#allocation3 + $0x564] sm:$0xf]  ;;  %v4720_v12 = vld [vmem:[#allocation3 + $0x3f4] sm:$0xf0]  ;;  %v3544_v16 = vor.u32 %v4688_v3, %v3543_v2 }
  0x4f   :  { %1428 = vmatpush.bf16.msra.mxu0 %v3540_v28  ;;  %1441 = vmatpush.bf16.msra.mxu1 %v3668_v29  ;;  %v3857_v23 = vld [vmem:[#allocation3 + $0x570] sm:$0xf0]  ;;  %v4665_v24 = vld [vmem:[#allocation3 + $0x244] sm:$0xf]  ;;  %v3732_v25 = vor.u32 %v4733_v17, %v3729_v18  ;;  %v3415_v14 = vld [vmem:[#allocation3 + $0x1e8] sm:$0xf] }
  0x50   :  { %1410 = vmatmul.bf16.vlgmr.msrb.gmra.mxu3 %v5097_v57  ;;  %v3457_v26 = vld [vmem:[#allocation3 + $0x250] sm:$0xf0]  ;;  %v4697_v27 = vld [vmem:[#allocation3 + $0x344] sm:$0xf]  ;;  %v3860_v31 = vor.u32 %v4765_v22, %v3857_v23  ;;  %v4656_v15 = vld [vmem:[#allocation3 + $0x1f4] sm:$0xf0] }
  0x51   :  { %1454 = vmatpush.bf16.msra.mxu3 %v3796_v33  ;;  %1422 = vmatpush.bf16.msra.mxu2 %v3300_v38  ;;  %v3585_v28 = vld [vmem:[#allocation3 + $0x350] sm:$0xf0]  ;;  %v4729_v29 = vld [vmem:[#allocation3 + $0x444] sm:$0xf]  ;;  %v3460_v33 = vor.u32 %v4665_v24, %v3457_v26  ;;  %v3271_v18 = vld [vmem:[#allocation3 + $0xc8] sm:$0xf]  ;;  %v3416_v23 = vor.u32 %v4656_v15, %v3415_v14 }
  0x52   :  { %v3713_v30 = vld [vmem:[#allocation3 + $0x450] sm:$0xf0]  ;;  %v4761_v32 = vld [vmem:[#allocation3 + $0x544] sm:$0xf]  ;;  %v3588_v35 = vor.u32 %v4697_v27, %v3585_v28  ;;  %v4684_v22 = vld [vmem:[#allocation3 + $0x2d4] sm:$0xf0] }
  0x53   :  { %1429 = vmatpush.bf16.msra.mxu0 %v3524_v43  ;;  %1442 = vmatpush.bf16.msra.mxu1 %v3652_v44  ;;  %v3841_v36 = vld [vmem:[#allocation3 + $0x550] sm:$0xf0]  ;;  %v4661_v37 = vld [vmem:[#allocation3 + $0x224] sm:$0xf]  ;;  %v3716_v40 = vor.u32 %v4729_v29, %v3713_v30  ;;  %v3655_v24 = vld [vmem:[#allocation3 + $0x3c8] sm:$0xf] }
  0x54   :  { %1423 = vmatmul.bf16.vlgmr.msra.gmra.mxu2 %v5103_v9  ;;  %v3441_v38 = vld [vmem:[#allocation3 + $0x230] sm:$0xf0]  ;;  %v4693_v41 = vld [vmem:[#allocation3 + $0x324] sm:$0xf]  ;;  %v3844_v45 = vor.u32 %v4761_v32, %v3841_v36  ;;  %v3399_v27 = vld [vmem:[#allocation3 + $0x1c8] sm:$0xf] }
  0x55   :  { %1467 = vmatpush.bf16.msrb.mxu2 %v3924_v42  ;;  %1455 = vmatpush.bf16.msra.mxu3 %v3780_v49  ;;  %v3569_v42 = vld [vmem:[#allocation3 + $0x330] sm:$0xf0]  ;;  %v4725_v43 = vld [vmem:[#allocation3 + $0x424] sm:$0xf]  ;;  %v3444_v49 = vor.u32 %v4661_v37, %v3441_v38  ;;  %v4652_v28 = vld [vmem:[#allocation3 + $0x1d4] sm:$0xf0] }
  0x56   :  { %v3697_v44 = vld [vmem:[#allocation3 + $0x430] sm:$0xf0]  ;;  %v4757_v46 = vld [vmem:[#allocation3 + $0x524] sm:$0xf]  ;;  %v3572_v50 = vor.u32 %v4693_v41, %v3569_v42  ;;  %v3255_v30 = vld [vmem:[#allocation3 + $0xa8] sm:$0xf]  ;;  %v3400_v36 = vor.u32 %v4652_v28, %v3399_v27 }
  0x57   :  { %1430 = vmatpush.bf16.msra.mxu0 %v3508_v58  ;;  %1443 = vmatpush.bf16.msra.mxu1 %v3636_v59  ;;  %v3825_v47 = vld [vmem:[#allocation3 + $0x530] sm:$0xf0]  ;;  %v4657_v51 = vld [vmem:[#allocation3 + $0x204] sm:$0xf]  ;;  %v3700_v55 = vor.u32 %v4725_v43, %v3697_v44  ;;  %v3639_v37 = vld [vmem:[#allocation3 + $0x3a8] sm:$0xf] }
  0x58   :  { %v3425_v52 = vld [vmem:[#allocation3 + $0x210] sm:$0xf0]  ;;  %v4689_v54 = vld [vmem:[#allocation3 + $0x304] sm:$0xf]  ;;  %v4712_v38 = vld [vmem:[#allocation3 + $0x3b4] sm:$0xf0] }
  0x59   :  { %1468 = vmatpush.bf16.msrb.mxu2 %v3908_v56  ;;  %1456 = vmatpush.bf16.msra.mxu3 %v3764_v0  ;;  %v3553_v56 = vld [vmem:[#allocation3 + $0x310] sm:$0xf0]  ;;  %v4721_v58 = vld [vmem:[#allocation3 + $0x404] sm:$0xf]  ;;  %v3828_v0 = vor.u32 %v4757_v46, %v3825_v47  ;;  %v3428_v4 = vor.u32 %v4657_v51, %v3425_v52  ;;  %v3383_v41 = vld [vmem:[#allocation3 + $0x1a8] sm:$0xf]  ;;  %v3640_v46 = vor.u32 %v4712_v38, %v3639_v37 }
  0x5a   :  { %v3681_v59 = vld [vmem:[#allocation3 + $0x410] sm:$0xf0]  ;;  %v4785_v63 = vld [vmem:[#allocation3 + $0x604] sm:$0xf]  ;;  %v3556_v5 = vor.u32 %v4689_v54, %v3553_v56  ;;  %v4648_v42 = vld [vmem:[#allocation3 + $0x1b4] sm:$0xf0] }
  0x5b   :  { %1431 = vmatpush.bf16.msra.mxu0 %v3492_v7  ;;  %1444 = vmatpush.bf16.msra.mxu1 %v3620_v8  ;;  %v3937_v1 = vld [vmem:[#allocation3 + $0x610] sm:$0xf0]  ;;  %v3684_v8 = vor.u32 %v4721_v58, %v3681_v59  ;;  %v3239_v44 = vld [vmem:[#allocation3 + $0x88] sm:$0xf]  ;;  %v4708_v52 = vld [vmem:[#allocation3 + $0x394] sm:$0xf0] }
  0x5c   :  { %v3809_v7 = vld [vmem:[#allocation3 + $0x510] sm:$0xf0]  ;;  %v3495_v47 = vld [vmem:[#allocation3 + $0x288] sm:$0xf]  ;;  %v4644_v56 = vld [vmem:[#allocation3 + $0x194] sm:$0xf0] }
  0x5d   :  { %1469 = vmatpush.bf16.msrb.mxu2 %v3892_v6  ;;  %1457 = vmatpush.bf16.msra.mxu3 %v3748_v13  ;;  %v4753_v6 = vld [vmem:[#allocation3 + $0x504] sm:$0xf]  ;;  %v3940_v13 = vor.u32 %v4785_v63, %v3937_v1  ;;  %v3623_v51 = vld [vmem:[#allocation3 + $0x388] sm:$0xf]  ;;  %v4608_v61 = vld [vmem:[#allocation3 + $0x74] sm:$0xf0] }
  0x5e   :  { %v3812_v17 = vor.u32 %v4753_v6, %v3809_v7  ;;  %v3223_v59 = vld [vmem:[#allocation3 + $0x68] sm:$0xf]  ;;  %v3624_v62 = vor.u32 %v4708_v52, %v3623_v51  ;;  %v4704_v3 = vld [vmem:[#allocation3 + $0x374] sm:$0xf0]  ;;  %v4622_v51 = vld [vmem:[#allocation3 + $0xec] sm:$0xf] }
  0x5f   :  { %1432 = vmatpush.bf16.msra.mxu0 %v3476_v20  ;;  %1445 = vmatpush.bf16.msra.mxu1 %v3604_v21  ;;  %v3672_v20 = vor.u32 %v4720_v12, %v3671_v11  ;;  %v3527_v21 = vld [vmem:[#allocation3 + $0x2c8] sm:$0xf]  ;;  %v4640_v6 = vld [vmem:[#allocation3 + $0x174] sm:$0xf0]  ;;  %v3289_v52 = vld [vmem:[#allocation3 + $0xf8] sm:$0xf0] }
  0x60   :  { %v3528_v29 = vor.u32 %v4684_v22, %v3527_v21  ;;  %v3479_v63 = vld [vmem:[#allocation3 + $0x268] sm:$0xf]  ;;  %v4600_v22 = vld [vmem:[#allocation3 + $0x34] sm:$0xf0] }
  0x61   :  { %1470 = vmatpush.bf16.msrb.mxu2 %v3876_v19  ;;  %1458 = vmatpush.bf16.msra.mxu3 %v3732_v25  ;;  %v4620_v19 = vld [vmem:[#allocation3 + $0xd4] sm:$0xf0]  ;;  %v3607_v2 = vld [vmem:[#allocation3 + $0x368] sm:$0xf] }
  0x62   :  { %v4716_v25 = vld [vmem:[#allocation3 + $0x3d4] sm:$0xf0]  ;;  %v3272_v26 = vor.u32 %v4620_v19, %v3271_v18  ;;  %v3608_v11 = vor.u32 %v4704_v3, %v3607_v2  ;;  %v3463_v12 = vld [vmem:[#allocation3 + $0x248] sm:$0xf]  ;;  %v3292_v3 = vor.u32 %v4622_v51, %v3289_v52 }
  0x63   :  { %1433 = vmatpush.bf16.msra.mxu0 %v3460_v33  ;;  %1446 = vmatpush.bf16.msra.mxu1 %v3588_v35  ;;  %v3656_v32 = vor.u32 %v4716_v25, %v3655_v24  ;;  %v3511_v33 = vld [vmem:[#allocation3 + $0x2a8] sm:$0xf]  ;;  %v4680_v35 = vld [vmem:[#allocation3 + $0x2b4] sm:$0xf0] }
  0x64   :  { %v3512_v43 = vor.u32 %v4680_v35, %v3511_v33  ;;  %v3591_v15 = vld [vmem:[#allocation3 + $0x348] sm:$0xf]  ;;  %v4636_v19 = vld [vmem:[#allocation3 + $0x154] sm:$0xf0] }
  0x65   :  { %1471 = vmatpush.bf16.msrb.mxu2 %v3860_v31  ;;  %1459 = vmatpush.bf16.msra.mxu3 %v3716_v40  ;;  %v4616_v31 = vld [vmem:[#allocation3 + $0xb4] sm:$0xf0]  ;;  %v3335_v18 = vld [vmem:[#allocation3 + $0x148] sm:$0xf] }
  0x66   :  { %v3256_v40 = vor.u32 %v4616_v31, %v3255_v30  ;;  %v3191_v21 = vld [vmem:[#allocation3 + $0x28] sm:$0xf]  ;;  %v4664_v25 = vld [vmem:[#allocation3 + $0x234] sm:$0xf0] }
  0x67   :  { %1434 = vmatpush.bf16.msra.mxu0 %v3444_v49  ;;  %1447 = vmatpush.bf16.msra.mxu1 %v3572_v50  ;;  %v4676_v49 = vld [vmem:[#allocation3 + $0x294] sm:$0xf0]  ;;  %v3384_v50 = vor.u32 %v4648_v42, %v3383_v41  ;;  %v3447_v24 = vld [vmem:[#allocation3 + $0x228] sm:$0xf] }
  0x68   :  { %v3496_v58 = vor.u32 %v4676_v49, %v3495_v47  ;;  %v3575_v27 = vld [vmem:[#allocation3 + $0x328] sm:$0xf]  ;;  %v4696_v28 = vld [vmem:[#allocation3 + $0x334] sm:$0xf0]  ;;  %v3448_v33 = vor.u32 %v4664_v25, %v3447_v24 }
  0x69   :  { %1472 = vmatpush.bf16.msrb.mxu2 %v3844_v45  ;;  %1460 = vmatpush.bf16.msra.mxu3 %v3700_v55  ;;  %v4612_v45 = vld [vmem:[#allocation3 + $0x94] sm:$0xf0]  ;;  %v3367_v55 = vld [vmem:[#allocation3 + $0x188] sm:$0xf]  ;;  %v3576_v38 = vor.u32 %v4696_v28, %v3575_v27  ;;  %v3385_v27 = vld [vmem:[#allocation3 + $0x1b8] sm:$0xf0] }
  0x6a   :  { %v3240_v54 = vor.u32 %v4612_v45, %v3239_v44  ;;  %v3368_v1 = vor.u32 %v4644_v56, %v3367_v55  ;;  %v3319_v30 = vld [vmem:[#allocation3 + $0x128] sm:$0xf]  ;;  %v4632_v31 = vld [vmem:[#allocation3 + $0x134] sm:$0xf0] }
  0x6b   :  { %1435 = vmatpush.bf16.msra.mxu0 %v3428_v4  ;;  %1448 = vmatpush.bf16.msra.mxu1 %v3556_v5  ;;  %v3224_v4 = vor.u32 %v4608_v61, %v3223_v59  ;;  %v3351_v5 = vld [vmem:[#allocation3 + $0x168] sm:$0xf]  ;;  %v4596_v35 = vld [vmem:[#allocation3 + $0x14] sm:$0xf0]  ;;  %v3320_v44 = vor.u32 %v4632_v31, %v3319_v30  ;;  %v4610_v30 = vld [vmem:[#allocation3 + $0x8c] sm:$0xf] }
  0x6c   :  { %v3352_v14 = vor.u32 %v4640_v6, %v3351_v5  ;;  %v4752_v37 = vld [vmem:[#allocation3 + $0x4f4] sm:$0xf0]  ;;  %v3431_v41 = vld [vmem:[#allocation3 + $0x208] sm:$0xf]  ;;  %v4618_v5 = vld [vmem:[#allocation3 + $0xcc] sm:$0xf] }
  0x6d   :  { %1473 = vmatpush.bf16.msrb.mxu2 %v3828_v0  ;;  %1461 = vmatpush.bf16.msra.mxu3 %v3684_v8  ;;  %v4672_v0 = vld [vmem:[#allocation3 + $0x274] sm:$0xf0]  ;;  %v3207_v8 = vld [vmem:[#allocation3 + $0x48] sm:$0xf]  ;;  %v3273_v6 = vld [vmem:[#allocation3 + $0xd8] sm:$0xf0] }
  0x6e   :  { %1436 = vmatmul.bf16.vlgmr.msra.gmra.mxu0 %v5095_v53  ;;  %1449 = vmatmul.bf16.vlgmr.msra.gmra.mxu1 %v5099_v60  ;;  %v3480_v7 = vor.u32 %v4672_v0, %v3479_v63  ;;  %v4660_v42 = vld [vmem:[#allocation3 + $0x214] sm:$0xf0]  ;;  %v3927_v56 = vld [vmem:[#allocation3 + $0x5e8] sm:$0xf]  ;;  %v4654_v0 = vld [vmem:[#allocation3 + $0x1ec] sm:$0xf] }
  0x6f   :  { %1493 = vmatpush.bf16.msrb.mxu1 %v3288_v10  ;;  %1519 = vmatpush.bf16.msrb.mxu0 %v3544_v16  ;;  %v4604_v10 = vld [vmem:[#allocation3 + $0x54] sm:$0xf0]  ;;  %v3432_v55 = vor.u32 %v4660_v42, %v3431_v41  ;;  %v3783_v59 = vld [vmem:[#allocation3 + $0x4c8] sm:$0xf]  ;;  %v3241_v31 = vld [vmem:[#allocation3 + $0x98] sm:$0xf0] }
  0x70   :  { %1462 = vmatmul.bf16.vlgmr.msra.gmra.mxu3 %v5117_v34  ;;  %v4700_v16 = vld [vmem:[#allocation3 + $0x354] sm:$0xf0]  ;;  %v3751_v24 = vld [vmem:[#allocation3 + $0x488] sm:$0xf]  ;;  %v3369_v41 = vld [vmem:[#allocation3 + $0x198] sm:$0xf0]  ;;  %v3244_v42 = vor.u32 %v4610_v30, %v3241_v31 }
  0x71   :  { %1487 = vmatpush.bf16.msrb.mxu3 %v3940_v13  ;;  %1474 = vmatpush.bf16.msrb.mxu2 %v3812_v17  ;;  %v4668_v13 = vld [vmem:[#allocation3 + $0x254] sm:$0xf0]  ;;  %v3208_v17 = vor.u32 %v4604_v10, %v3207_v8  ;;  %v3911_v10 = vld [vmem:[#allocation3 + $0x5c8] sm:$0xf]  ;;  %v3673_v30 = vld [vmem:[#allocation3 + $0x3f8] sm:$0xf0] }
  0x72   :  { %v4692_v45 = vld [vmem:[#allocation3 + $0x314] sm:$0xf0]  ;;  %v3719_v51 = vld [vmem:[#allocation3 + $0x448] sm:$0xf] }
  0x73   :  { %1494 = vmatpush.bf16.msrb.mxu1 %v3272_v26  ;;  %1520 = vmatpush.bf16.msrb.mxu0 %v3528_v29  ;;  %v3336_v26 = vor.u32 %v4636_v19, %v3335_v18  ;;  %v3192_v29 = vor.u32 %v4600_v22, %v3191_v21  ;;  %v4788_v47 = vld [vmem:[#allocation3 + $0x614] sm:$0xf0]  ;;  %v4614_v18 = vld [vmem:[#allocation3 + $0xac] sm:$0xf]  ;;  %v3257_v19 = vld [vmem:[#allocation3 + $0xb8] sm:$0xf0] }
  0x74   :  { %1475 = vmatmul.bf16.vlgmr.msrb.gmra.mxu2 %v5119_v39  ;;  %v3895_v22 = vld [vmem:[#allocation3 + $0x5a8] sm:$0xf]  ;;  %v4740_v25 = vld [vmem:[#allocation3 + $0x494] sm:$0xf0]  ;;  %v3260_v28 = vor.u32 %v4614_v18, %v3257_v19  ;;  %v3321_v18 = vld [vmem:[#allocation3 + $0x138] sm:$0xf0] }
  0x75   :  { %1532 = vmatpush.bf16.msra.mxu2 %v3672_v20  ;;  %1506 = vmatpush.bf16.msra.mxu3 %v3416_v23  ;;  %v3464_v20 = vor.u32 %v4668_v13, %v3463_v12  ;;  %v3592_v23 = vor.u32 %v4700_v16, %v3591_v15  ;;  %v3767_v12 = vld [vmem:[#allocation3 + $0x4a8] sm:$0xf]  ;;  %v4744_v13 = vld [vmem:[#allocation3 + $0x4b4] sm:$0xf0]  ;;  %v3401_v15 = vld [vmem:[#allocation3 + $0x1d8] sm:$0xf0]  ;;  %v3276_v16 = vor.u32 %v4618_v5, %v3273_v6 }
  0x76   :  { %v4732_v52 = vld [vmem:[#allocation3 + $0x454] sm:$0xf0]  ;;  %v3337_v5 = vld [vmem:[#allocation3 + $0x158] sm:$0xf0] }
  0x77   :  { %1495 = vmatpush.bf16.msrb.mxu1 %v3256_v40  ;;  %1521 = vmatpush.bf16.msrb.mxu0 %v3512_v43  ;;  %v3303_v40 = vld [vmem:[#allocation3 + $0x108] sm:$0xf] }
  0x78   :  { %v3559_v43 = vld [vmem:[#allocation3 + $0x308] sm:$0xf] }
  0x79   :  { %1533 = vmatpush.bf16.msra.mxu2 %v3656_v32  ;;  %1507 = vmatpush.bf16.msra.mxu3 %v3400_v36  ;;  %v3175_v32 = vld [vmem:[#allocation3 + $0x8] sm:$0xf]  ;;  %v3560_v61 = vor.u32 %v4692_v45, %v3559_v43  ;;  %v3225_v45 = vld [vmem:[#allocation3 + $0x78] sm:$0xf0] }
  0x7a   :  { %v3799_v36 = vld [vmem:[#allocation3 + $0x4e8] sm:$0xf]  ;;  %v3176_v49 = vor.u32 %v4596_v35, %v3175_v32  ;;  %v3752_v32 = vor.u32 %v4740_v25, %v3751_v24  ;;  %v4594_v24 = vld [vmem:[#allocation3 + $0xc] sm:$0xf]  ;;  %v3177_v25 = vld [vmem:[#allocation3 + $0x18] sm:$0xf0] }
  0x7b   :  { %1496 = vmatpush.bf16.msrb.mxu1 %v3240_v54  ;;  %1522 = vmatpush.bf16.msrb.mxu0 %v3496_v58  ;;  %v3800_v54 = vor.u32 %v4752_v37, %v3799_v36  ;;  %v4784_v58 = vld [vmem:[#allocation3 + $0x5f4] sm:$0xf0]  ;;  %v3879_v35 = vld [vmem:[#allocation3 + $0x588] sm:$0xf] }
  0x7c   :  { %v4772_v36 = vld [vmem:[#allocation3 + $0x594] sm:$0xf0]  ;;  %v3735_v37 = vld [vmem:[#allocation3 + $0x468] sm:$0xf] }
  0x7d   :  { %1534 = vmatpush.bf16.msra.mxu2 %v3640_v46  ;;  %1508 = vmatpush.bf16.msra.mxu3 %v3384_v50  ;;  %v3943_v46 = vld [vmem:[#allocation3 + $0x608] sm:$0xf]  ;;  %v4628_v50 = vld [vmem:[#allocation3 + $0x114] sm:$0xf0]  ;;  %v3880_v43 = vor.u32 %v4772_v36, %v3879_v35  ;;  %v4682_v35 = vld [vmem:[#allocation3 + $0x2cc] sm:$0xf]  ;;  %v3180_v36 = vor.u32 %v4594_v24, %v3177_v25 }
  0x7e   :  { %v3944_v63 = vor.u32 %v4788_v47, %v3943_v46  ;;  %v3304_v2 = vor.u32 %v4628_v50, %v3303_v40  ;;  %v4642_v40 = vld [vmem:[#allocation3 + $0x18c] sm:$0xf]  ;;  %v4768_v50 = vld [vmem:[#allocation3 + $0x574] sm:$0xf0] }
  0x7f   :  { %1497 = vmatpush.bf16.msrb.mxu1 %v3224_v4  ;;  %1523 = vmatpush.bf16.msrb.mxu0 %v3480_v7  ;;  %v3928_v4 = vor.u32 %v4784_v58, %v3927_v56  ;;  %v3372_v47 = vor.u32 %v4642_v40, %v3369_v41  ;;  %v3305_v40 = vld [vmem:[#allocation3 + $0x118] sm:$0xf0]  ;;  %v4702_v24 = vld [vmem:[#allocation3 + $0x36c] sm:$0xf] }
  0x80   :  { %3950 = vmatmul.msk.bf16.vlgmr.msrb.gmra.mxu3 %vm1307_vm0, %v5110_v48 }
  0x81   :  { %1535 = vmatpush.bf16.msra.mxu2 %v3624_v62  ;;  %1509 = vmatpush.bf16.msra.mxu3 %v3368_v1  ;;  %v4748_v62 = vld [vmem:[#allocation3 + $0x4d4] sm:$0xf0]  ;;  %v3417_v1 = vld [vmem:[#allocation3 + $0x1f8] sm:$0xf0] }
  0x82   :  { %v3784_v7 = vor.u32 %v4748_v62, %v3783_v59  ;;  %v3420_v8 = vor.u32 %v4654_v0, %v3417_v1  ;;  %v4602_v59 = vld [vmem:[#allocation3 + $0x4c] sm:$0xf]  ;;  %v3720_v62 = vor.u32 %v4732_v52, %v3719_v51  ;;  %v3847_v0 = vld [vmem:[#allocation3 + $0x548] sm:$0xf]  ;;  %v4764_v1 = vld [vmem:[#allocation3 + $0x554] sm:$0xf0] }
  0x83   :  { %1498 = vmatpush.bf16.msrb.mxu1 %v3208_v17  ;;  %1524 = vmatpush.bf16.msrb.mxu0 %v3464_v20  ;;  %v3768_v20 = vor.u32 %v4744_v13, %v3767_v12  ;;  %v3831_v13 = vld [vmem:[#allocation3 + $0x528] sm:$0xf]  ;;  %v4746_v51 = vld [vmem:[#allocation3 + $0x4cc] sm:$0xf]  ;;  %v3785_v52 = vld [vmem:[#allocation3 + $0x4d8] sm:$0xf0] }
  0x85   :  { %1536 = vmatpush.bf16.msra.mxu2 %v3608_v11  ;;  %1510 = vmatpush.bf16.msra.mxu3 %v3352_v14  ;;  %v4780_v11 = vld [vmem:[#allocation3 + $0x5d4] sm:$0xf0]  ;;  %v4650_v14 = vld [vmem:[#allocation3 + $0x1cc] sm:$0xf] }
  0x86   :  { %v3912_v17 = vor.u32 %v4780_v11, %v3911_v10  ;;  %v3404_v21 = vor.u32 %v4650_v14, %v3401_v15  ;;  %v3193_v10 = vld [vmem:[#allocation3 + $0x38] sm:$0xf0]  ;;  %v4760_v14 = vld [vmem:[#allocation3 + $0x534] sm:$0xf0]  ;;  %v3687_v15 = vld [vmem:[#allocation3 + $0x408] sm:$0xf] }
  0x87   :  { %1499 = vmatpush.bf16.msrb.mxu1 %v3192_v29  ;;  %1525 = vmatpush.bf16.msrb.mxu0 %v3448_v33 }
  0x89   :  { %1537 = vmatpush.bf16.msra.mxu2 %v3592_v23  ;;  %1511 = vmatpush.bf16.msra.mxu3 %v3336_v26  ;;  %v4776_v23 = vld [vmem:[#allocation3 + $0x5b4] sm:$0xf0]  ;;  %v4646_v26 = vld [vmem:[#allocation3 + $0x1ac] sm:$0xf] }
  0x8a   :  { %v3896_v29 = vor.u32 %v4776_v23, %v3895_v22  ;;  %v3388_v33 = vor.u32 %v4646_v26, %v3385_v27  ;;  %v3832_v22 = vor.u32 %v4760_v14, %v3831_v13  ;;  %v3815_v23 = vld [vmem:[#allocation3 + $0x508] sm:$0xf]  ;;  %v3625_v14 = vld [vmem:[#allocation3 + $0x398] sm:$0xf0] }
  0x8b   :  { %1500 = vmatpush.bf16.msrb.mxu1 %v3176_v49  ;;  %1526 = vmatpush.bf16.msrb.mxu0 %v3432_v55  ;;  %v3863_v49 = vld [vmem:[#allocation3 + $0x568] sm:$0xf]  ;;  %v3353_v55 = vld [vmem:[#allocation3 + $0x178] sm:$0xf0] }
  0x8c   :  { %v3864_v58 = vor.u32 %v4768_v50, %v3863_v49  ;;  %v3657_v50 = vld [vmem:[#allocation3 + $0x3d8] sm:$0xf0] }
  0x8d   :  { %1538 = vmatpush.bf16.msra.mxu2 %v3576_v38  ;;  %1512 = vmatpush.bf16.msra.mxu3 %v3320_v44  ;;  %v4736_v38 = vld [vmem:[#allocation3 + $0x474] sm:$0xf0]  ;;  %v4606_v44 = vld [vmem:[#allocation3 + $0x6c] sm:$0xf] }
  0x8e   :  { %1527 = vmatmul.bf16.vlgmr.msrb.gmra.mxu0 %v5095_v53  ;;  %1501 = vmatmul.bf16.vlgmr.msrb.gmra.mxu1 %v5097_v57  ;;  %v3736_v46 = vor.u32 %v4736_v38, %v3735_v37  ;;  %v3228_v56 = vor.u32 %v4606_v44, %v3225_v45  ;;  %v3529_v37 = vld [vmem:[#allocation3 + $0x2d8] sm:$0xf0]  ;;  %v4626_v38 = vld [vmem:[#allocation3 + $0x10c] sm:$0xf] }
  0x8f   :  { %1545 = vmatpush.bf16.msra.mxu1 %v3800_v54  ;;  %1578 = vmatpush.bf16.msra.mxu0 %v3944_v63  ;;  %v4638_v54 = vld [vmem:[#allocation3 + $0x16c] sm:$0xf]  ;;  %v3308_v49 = vor.u32 %v4626_v38, %v3305_v40 }
  0x90   :  { %v3356_v63 = vor.u32 %v4638_v54, %v3353_v55  ;;  %v4678_v55 = vld [vmem:[#allocation3 + $0x2ac] sm:$0xf] }
  0x91   :  { %1539 = vmatpush.bf16.msra.mxu2 %v3560_v61  ;;  %1513 = vmatpush.bf16.msra.mxu3 %v3304_v2  ;;  %v3209_v61 = vld [vmem:[#allocation3 + $0x58] sm:$0xf0]  ;;  %v3703_v2 = vld [vmem:[#allocation3 + $0x428] sm:$0xf]  ;;  %v4698_v38 = vld [vmem:[#allocation3 + $0x34c] sm:$0xf] }
  0x92   :  { %v3212_v6 = vor.u32 %v4602_v59, %v3209_v61  ;;  %v3913_v59 = vld [vmem:[#allocation3 + $0x5d8] sm:$0xf0] }
  0x93   :  { %1546 = vmatpush.bf16.msra.mxu1 %v3784_v7  ;;  %1597 = vmatpush.bf16.msrb.mxu0 %v3420_v8  ;;  %v3848_v7 = vor.u32 %v4764_v1, %v3847_v0  ;;  %v4598_v8 = vld [vmem:[#allocation3 + $0x2c] sm:$0xf]  ;;  %v3641_v1 = vld [vmem:[#allocation3 + $0x3b8] sm:$0xf0] }
  0x94   :  { %1514 = vmatmul.bf16.vlgmr.msra.gmra.mxu3 %v5103_v9  ;;  %1540 = vmatmul.bf16.vlgmr.msra.gmra.mxu2 %v5099_v60  ;;  %v3196_v19 = vor.u32 %v4598_v8, %v3193_v10  ;;  %v3897_v8 = vld [vmem:[#allocation3 + $0x5b8] sm:$0xf0] }
  0x95   :  { %1584 = vmatpush.bf16.msrb.mxu2 %v3292_v3  ;;  %1558 = vmatpush.bf16.msrb.mxu3 %v3928_v4  ;;  %v4728_v3 = vld [vmem:[#allocation3 + $0x434] sm:$0xf0]  ;;  %v4634_v4 = vld [vmem:[#allocation3 + $0x14c] sm:$0xf] }
  0x96   :  { %v3704_v11 = vor.u32 %v4728_v3, %v3703_v2  ;;  %v3340_v12 = vor.u32 %v4634_v4, %v3337_v5  ;;  %v4742_v2 = vld [vmem:[#allocation3 + $0x4ac] sm:$0xf]  ;;  %v3769_v3 = vld [vmem:[#allocation3 + $0x4b8] sm:$0xf0] }
  0x97   :  { %1547 = vmatpush.bf16.msra.mxu1 %v3768_v20  ;;  %1598 = vmatpush.bf16.msrb.mxu0 %v3404_v21  ;;  %v4686_v20 = vld [vmem:[#allocation3 + $0x2ec] sm:$0xf]  ;;  %v3545_v21 = vld [vmem:[#allocation3 + $0x2f8] sm:$0xf0] }
  0x98   :  { %v3548_v31 = vor.u32 %v4686_v20, %v3545_v21  ;;  %v4674_v5 = vld [vmem:[#allocation3 + $0x28c] sm:$0xf]  ;;  %v3881_v21 = vld [vmem:[#allocation3 + $0x598] sm:$0xf0] }
  0x99   :  { %1585 = vmatpush.bf16.msrb.mxu2 %v3276_v16  ;;  %1559 = vmatpush.bf16.msrb.mxu3 %v3912_v17  ;;  %v4724_v16 = vld [vmem:[#allocation3 + $0x414] sm:$0xf0]  ;;  %v4630_v17 = vld [vmem:[#allocation3 + $0x12c] sm:$0xf] }
  0x9a   :  { %v3688_v26 = vor.u32 %v4724_v16, %v3687_v15  ;;  %v3324_v27 = vor.u32 %v4630_v17, %v3321_v18  ;;  %v4738_v15 = vld [vmem:[#allocation3 + $0x48c] sm:$0xf]  ;;  %v3753_v16 = vld [vmem:[#allocation3 + $0x498] sm:$0xf0] }
  0x9b   :  { %1548 = vmatpush.bf16.msra.mxu1 %v3752_v32  ;;  %1599 = vmatpush.bf16.msrb.mxu0 %v3388_v33  ;;  %v4750_v32 = vld [vmem:[#allocation3 + $0x4ec] sm:$0xf]  ;;  %v3801_v33 = vld [vmem:[#allocation3 + $0x4f8] sm:$0xf0] }
  0x9c   :  { %v3804_v45 = vor.u32 %v4750_v32, %v3801_v33  ;;  %v4670_v18 = vld [vmem:[#allocation3 + $0x26c] sm:$0xf]  ;;  %v3865_v33 = vld [vmem:[#allocation3 + $0x578] sm:$0xf0] }
  0x9d   :  { %1586 = vmatpush.bf16.msrb.mxu2 %v3260_v28  ;;  %1560 = vmatpush.bf16.msrb.mxu3 %v3896_v29  ;;  %v4756_v28 = vld [vmem:[#allocation3 + $0x514] sm:$0xf0]  ;;  %v4718_v29 = vld [vmem:[#allocation3 + $0x3ec] sm:$0xf] }
  0x9e   :  { %3951 = vmatmul.msk.bf16.vlgmr.msra.gmra.mxu0 %vm1307_vm0, %v5110_v48  ;;  %v3816_v41 = vor.u32 %v4756_v28, %v3815_v23  ;;  %v3676_v44 = vor.u32 %v4718_v29, %v3673_v30  ;;  %v3756_v23 = vor.u32 %v4738_v15, %v3753_v16  ;;  %v3737_v28 = vld [vmem:[#allocation3 + $0x478] sm:$0xf0]  ;;  %v4666_v30 = vld [vmem:[#allocation3 + $0x24c] sm:$0xf] }
  0x9f   :  { %1549 = vmatpush.bf16.msra.mxu1 %v3736_v46  ;;  %1600 = vmatpush.bf16.msrb.mxu0 %v3372_v47  ;;  %v4714_v46 = vld [vmem:[#allocation3 + $0x3cc] sm:$0xf]  ;;  %v3532_v47 = vor.u32 %v4682_v35, %v3529_v37  ;;  %v3689_v15 = vld [vmem:[#allocation3 + $0x418] sm:$0xf0] }
  0xa0   :  { %v3660_v61 = vor.u32 %v4714_v46, %v3657_v50  ;;  %v4766_v32 = vld [vmem:[#allocation3 + $0x56c] sm:$0xf] }
  0xa1   :  { %1587 = vmatpush.bf16.msrb.mxu2 %v3244_v42  ;;  %1561 = vmatpush.bf16.msrb.mxu3 %v3880_v43  ;;  %v4782_v42 = vld [vmem:[#allocation3 + $0x5ec] sm:$0xf]  ;;  %v3929_v43 = vld [vmem:[#allocation3 + $0x5f8] sm:$0xf0] }
  0xa2   :  { %v3932_v54 = vor.u32 %v4782_v42, %v3929_v43  ;;  %v3593_v42 = vld [vmem:[#allocation3 + $0x358] sm:$0xf0]  ;;  %v4730_v43 = vld [vmem:[#allocation3 + $0x44c] sm:$0xf] }
  0xa3   :  { %1550 = vmatpush.bf16.msra.mxu1 %v3720_v62  ;;  %1601 = vmatpush.bf16.msrb.mxu0 %v3356_v63  ;;  %v3788_v62 = vor.u32 %v4746_v51, %v3785_v52  ;;  %v4710_v63 = vld [vmem:[#allocation3 + $0x3ac] sm:$0xf]  ;;  %v3849_v51 = vld [vmem:[#allocation3 + $0x558] sm:$0xf0]  ;;  %v3596_v52 = vor.u32 %v4698_v38, %v3593_v42  ;;  %v4035_v42 = vld [vmem:[#allocation5 + $0xa0] sm:$0xf] }
  0xa4   :  { %v3644_v10 = vor.u32 %v4710_v63, %v3641_v1  ;;  %v4662_v46 = vld [vmem:[#allocation3 + $0x22c] sm:$0xf] }
  0xa5   :  { %1588 = vmatpush.bf16.msrb.mxu2 %v3228_v56  ;;  %1562 = vmatpush.bf16.msrb.mxu3 %v3864_v58  ;;  %v3513_v56 = vld [vmem:[#allocation3 + $0x2b8] sm:$0xf0]  ;;  %v4778_v58 = vld [vmem:[#allocation3 + $0x5cc] sm:$0xf] }
  0xa6   :  { %v3516_v0 = vor.u32 %v4678_v55, %v3513_v56  ;;  %v3916_v4 = vor.u32 %v4778_v58, %v3913_v59  ;;  %v4762_v50 = vld [vmem:[#allocation3 + $0x54c] sm:$0xf]  ;;  %v3577_v58 = vld [vmem:[#allocation3 + $0x338] sm:$0xf0] }
  0xa7   :  { %1551 = vmatpush.bf16.msra.mxu1 %v3704_v11  ;;  %1602 = vmatpush.bf16.msrb.mxu0 %v3340_v12  ;;  %v3772_v11 = vor.u32 %v4742_v2, %v3769_v3  ;;  %v4706_v12 = vld [vmem:[#allocation3 + $0x38c] sm:$0xf]  ;;  %v3833_v3 = vld [vmem:[#allocation3 + $0x538] sm:$0xf0] }
  0xa8   :  { %v4694_v55 = vld [vmem:[#allocation3 + $0x32c] sm:$0xf] }
  0xa9   :  { %1589 = vmatpush.bf16.msrb.mxu2 %v3212_v6  ;;  %1563 = vmatpush.bf16.msrb.mxu3 %v3848_v7  ;;  %v3497_v6 = vld [vmem:[#allocation3 + $0x298] sm:$0xf0]  ;;  %v4774_v7 = vld [vmem:[#allocation3 + $0x5ac] sm:$0xf] }
  0xaa   :  { %v3500_v13 = vor.u32 %v4674_v5, %v3497_v6  ;;  %v3900_v17 = vor.u32 %v4774_v7, %v3897_v8  ;;  %v4726_v59 = vld [vmem:[#allocation3 + $0x42c] sm:$0xf]  ;;  %v3945_v5 = vld [vmem:[#allocation3 + $0x618] sm:$0xf0]  ;;  %v5152_v6 = vld [vmem:[%s5419_s3] sm:$0xf]  ;;  %v3580_v8 = vor.u32 %v4694_v55, %v3577_v58 }
  0xab   :  { %1552 = vmatpush.bf16.msra.mxu1 %v3688_v26  ;;  %1603 = vmatpush.bf16.msrb.mxu0 %v3324_v27  ;;  %v3609_v26 = vld [vmem:[#allocation3 + $0x378] sm:$0xf0]  ;;  %v4734_v27 = vld [vmem:[#allocation3 + $0x46c] sm:$0xf] }
  0xac   :  { %v3740_v37 = vor.u32 %v4734_v27, %v3737_v28  ;;  %v4658_v63 = vld [vmem:[#allocation3 + $0x20c] sm:$0xf] }
  0xad   :  { %1590 = vmatpush.bf16.msrb.mxu2 %v3196_v19  ;;  %1564 = vmatpush.bf16.msrb.mxu3 %v3832_v22  ;;  %v3481_v19 = vld [vmem:[#allocation3 + $0x278] sm:$0xf0]  ;;  %v3628_v22 = vor.u32 %v4706_v12, %v3625_v14  ;;  %v4758_v1 = vld [vmem:[#allocation3 + $0x52c] sm:$0xf] }
  0xae   :  { %1553 = vmatmul.bf16.vlgmr.msra.gmra.mxu1 %v5117_v34  ;;  %v3484_v25 = vor.u32 %v4670_v18, %v3481_v19  ;;  %v4722_v14 = vld [vmem:[#allocation3 + $0x40c] sm:$0xf]  ;;  %v4067_v18 = vld [vmem:[#allocation5 + $0xe0] sm:$0xf]  ;;  %v4819_v19 = vld [vmem:[#allocation5 + $0xec] sm:$0xf0] }
  0xaf   :  { %1610 = vmatpush.bf16.msrb.mxu1 %v3548_v31  ;;  %1604 = vmatpush.bf16.msrb.mxu0 %v3308_v49  ;;  %v5141_v20 = vpop.f32.mrf.mxu0  ;;  %v5143_v29 = vpop.f32.mrf.mxu1  ;;  %v3465_v31 = vld [vmem:[#allocation3 + $0x258] sm:$0xf0]  ;;  %v3692_v27 = vor.u32 %v4722_v14, %v3689_v15  ;;  %v4068_v28 = vor.u32 %v4819_v19, %v4067_v18  ;;  %v4099_v15 = vld [vmem:[#allocation5 + $0x120] sm:$0xf]  ;;  %v4791_v19 = vld [vmem:[#allocation5 + $0xc] sm:$0xf0] }
  0xb0   :  { %v3468_v40 = vor.u32 %v4666_v30, %v3465_v31  ;;  %v4051_v30 = vld [vmem:[#allocation5 + $0xc0] sm:$0xf]  ;;  %v4815_v31 = vld [vmem:[#allocation5 + $0xcc] sm:$0xf0] }
  0xb1   :  { %1591 = vmatpush.bf16.msrb.mxu2 %v3180_v36  ;;  %1565 = vmatpush.bf16.msrb.mxu3 %v3816_v41  ;;  %v3612_v36 = vor.u32 %v4702_v24, %v3609_v26  ;;  %v4851_v24 = vld [vmem:[#allocation5 + $0x1ec] sm:$0xf0]  ;;  %v3955_v18 = vld [vmem:[#allocation5] sm:$0xf] }
  0xb2   :  { %1605 = vmatmul.bf16.vlgmr.msrb.gmra.mxu0 %v5103_v9  ;;  %v5145_v35 = vpop.f32.mrf.mxu2 }
  0xb3   :  { %1611 = vmatpush.bf16.msrb.mxu1 %v3532_v47  ;;  %1649 = vmatpush.bf16.msra.mxu0 %v3932_v54  ;;  %v5147_v41 = vpop.f32.mrf.mxu3  ;;  %v3449_v47 = vld [vmem:[#allocation3 + $0x238] sm:$0xf0] }
  0xb4   :  { %1566 = vmatmul.bf16.vlgmr.msrb.gmra.mxu3 %v5119_v39  ;;  %1592 = vmatmul.bf16.vlgmr.msrb.gmra.mxu2 %v5097_v57  ;;  %v4770_v57 = vld [vmem:[#allocation3 + $0x58c] sm:$0xf]  ;;  %v3452_v56 = vor.u32 %v4662_v46, %v3449_v47  ;;  %v4843_v46 = vld [vmem:[#allocation5 + $0x1ac] sm:$0xf0] }
  0xb5   :  { %1623 = vmatpush.bf16.msra.mxu3 %v3676_v44  ;;  %1636 = vmatpush.bf16.msra.mxu2 %v3804_v45  ;;  %v3884_v9 = vor.u32 %v4770_v57, %v3881_v21  ;;  %v3721_v44 = vld [vmem:[#allocation3 + $0x458] sm:$0xf0]  ;;  %v3868_v45 = vor.u32 %v4766_v32, %v3865_v33  ;;  %v4754_v57 = vld [vmem:[#allocation3 + $0x50c] sm:$0xf]  ;;  %v4179_v33 = vld [vmem:[#allocation5 + $0x1c0] sm:$0xf] }
  0xb6   :  { %v3724_v54 = vor.u32 %v4730_v43, %v3721_v44  ;;  %v4811_v43 = vld [vmem:[#allocation5 + $0xac] sm:$0xf0] }
  0xb7   :  { %1612 = vmatpush.bf16.msrb.mxu1 %v3516_v0  ;;  %1650 = vmatpush.bf16.msra.mxu0 %v3916_v4  ;;  %v1322_v49 = vpop.f32.mrf.mxu0  ;;  %v3433_v0 = vld [vmem:[#allocation3 + $0x218] sm:$0xf0]  ;;  %v1335_v2 = vpop.f32.mrf.mxu1  ;;  %v4786_v4 = vld [vmem:[#allocation3 + $0x60c] sm:$0xf] }
  0xb8   :  { %v3436_v12 = vor.u32 %v4658_v63, %v3433_v0  ;;  %v3948_v21 = vor.u32 %v4786_v4, %v3945_v5  ;;  %v4807_v49 = vld [vmem:[#allocation5 + $0x8c] sm:$0xf0]  ;;  %v4115_v4 = vld [vmem:[#allocation5 + $0x140] sm:$0xf] }
  0xb9   :  { %1624 = vmatpush.bf16.msra.mxu3 %v3660_v61  ;;  %1637 = vmatpush.bf16.msra.mxu2 %v3788_v62  ;;  %v3705_v61 = vld [vmem:[#allocation3 + $0x438] sm:$0xf0]  ;;  %v3852_v62 = vor.u32 %v4762_v50, %v3849_v51  ;;  %v4799_v2 = vld [vmem:[#allocation5 + $0x4c] sm:$0xf0] }
  0xba   :  { %v1348_v7 = vpop.f32.mrf.mxu2  ;;  %v4831_v5 = vld [vmem:[#allocation5 + $0x14c] sm:$0xf0] }
  0xbb   :  { %1613 = vmatpush.bf16.msrb.mxu1 %v3500_v13  ;;  %1651 = vmatpush.bf16.msra.mxu0 %v3900_v17  ;;  %v3561_v13 = vld [vmem:[#allocation3 + $0x318] sm:$0xf0]  ;;  %v1361_v16 = vpop.f32.mrf.mxu3  ;;  %v3836_v17 = vor.u32 %v4758_v1, %v3833_v3  ;;  %v3987_v1 = vld [vmem:[#allocation5 + $0x40] sm:$0xf]  ;;  %v4116_v14 = vor.u32 %v4831_v5, %v4115_v4  ;;  %v4867_v4 = vld [vmem:[#allocation5 + $0x26c] sm:$0xf0] }
  0xbc   :  { %v4827_v16 = vld [vmem:[#allocation5 + $0x12c] sm:$0xf0]  ;;  %v296_v5 = vperm.slane %v5152_v6, 1 }
  0xbd   :  { %1625 = vmatpush.bf16.msra.mxu3 %v3644_v10  ;;  %1638 = vmatpush.bf16.msra.mxu2 %v3772_v11  ;;  %v3708_v10 = vor.u32 %v4726_v59, %v3705_v61  ;;  %v4690_v11 = vld [vmem:[#allocation3 + $0x30c] sm:$0xf]  ;;  %v4803_v59 = vld [vmem:[#allocation5 + $0x6c] sm:$0xf0]  ;;  %v4131_v61 = vld [vmem:[#allocation5 + $0x160] sm:$0xf] }
  0xbe   :  { %v3564_v26 = vor.u32 %v4690_v11, %v3561_v13  ;;  %v4795_v13 = vld [vmem:[#allocation5 + $0x2c] sm:$0xf0] }
  0xbf   :  { %1614 = vmatpush.bf16.msrb.mxu1 %v3484_v25  ;;  %1652 = vmatpush.bf16.msra.mxu0 %v3884_v9  ;;  %v295_v25 = vperm.slane %v5152_v6, 0 }
  0xc1   :  { %1626 = vmatpush.bf16.msra.mxu3 %v3628_v22  ;;  %1639 = vmatpush.bf16.msra.mxu2 %v3756_v23  ;;  %v3817_v22 = vld [vmem:[#allocation3 + $0x518] sm:$0xf0]  ;;  %v4195_v23 = vld [vmem:[#allocation5 + $0x1e0] sm:$0xf] }
  0xc2   :  { %v3820_v9 = vor.u32 %v4754_v57, %v3817_v22  ;;  %v4196_v32 = vor.u32 %v4851_v24, %v4195_v23  ;;  %v4323_v22 = vld [vmem:[#allocation5 + $0x2e0] sm:$0xf]  ;;  %v4883_v23 = vld [vmem:[#allocation5 + $0x2ec] sm:$0xf0] }
  0xc3   :  { %1615 = vmatpush.bf16.msrb.mxu1 %v3468_v40  ;;  %1653 = vmatpush.bf16.msra.mxu0 %v3868_v45  ;;  %v5157_v38 = vpop.f32.mrf.mxu2  ;;  %v4052_v40 = vor.u32 %v4815_v31, %v4051_v30  ;;  %v4163_v45 = vld [vmem:[#allocation5 + $0x1a0] sm:$0xf]  ;;  %v4197_v30 = vld [vmem:[#allocation5 + $0x1f0] sm:$0xf0]  ;;  %v3956_v31 = vor.u32 %v4791_v19, %v3955_v18  ;;  %v4797_v19 = vld [vmem:[#allocation5 + $0x44] sm:$0xf] }
  0xc4   :  { %v4164_v50 = vor.u32 %v4843_v46, %v4163_v45  ;;  %v4845_v46 = vld [vmem:[#allocation5 + $0x1c4] sm:$0xf] }
  0xc5   :  { %1627 = vmatpush.bf16.msra.mxu3 %v3612_v36  ;;  %1640 = vmatpush.bf16.msra.mxu2 %v3740_v37  ;;  %v4847_v36 = vld [vmem:[#allocation5 + $0x1cc] sm:$0xf0]  ;;  %v1321_v37 = vadd.f32 %v5141_v20, %v295_v25  ;;  %v4019_v20 = vld [vmem:[#allocation5 + $0x80] sm:$0xf]  ;;  %v4069_v25 = vld [vmem:[#allocation5 + $0xf0] sm:$0xf0] }
  0xc6   :  { %v4180_v44 = vor.u32 %v4847_v36, %v4179_v33  ;;  %v4020_v58 = vor.u32 %v4807_v49, %v4019_v20  ;;  %v4291_v49 = vld [vmem:[#allocation5 + $0x2a0] sm:$0xf] }
  0xc7   :  { %1616 = vmatpush.bf16.msrb.mxu1 %v3452_v56  ;;  %1654 = vmatpush.bf16.msra.mxu0 %v3852_v62  ;;  %v1334_v47 = vadd.f32 %v5143_v29, %v1321_v37  ;;  %v4003_v29 = vld [vmem:[#allocation5 + $0x60] sm:$0xf] }
  0xc8   :  { %v4004_v63 = vor.u32 %v4803_v59, %v4003_v29  ;;  %v4275_v29 = vld [vmem:[#allocation5 + $0x280] sm:$0xf]  ;;  %v4871_v59 = vld [vmem:[#allocation5 + $0x28c] sm:$0xf0] }
  0xc9   :  { %1628 = vmatpush.bf16.msra.mxu3 %v3596_v52  ;;  %1641 = vmatpush.bf16.msra.mxu2 %v3724_v54  ;;  %v4147_v52 = vld [vmem:[#allocation5 + $0x180] sm:$0xf]  ;;  %v4839_v54 = vld [vmem:[#allocation5 + $0x18c] sm:$0xf0]  ;;  %v1347_v55 = vadd.f32 %v5145_v35, %v1334_v47  ;;  %v4181_v47 = vld [vmem:[#allocation5 + $0x1d0] sm:$0xf0] }
  0xcb   :  { %1617 = vmatpush.bf16.msrb.mxu1 %v3436_v12  ;;  %1655 = vmatpush.bf16.msra.mxu0 %v3836_v17  ;;  %v1372_v51 = vpop.f32.mrf.mxu0  ;;  %v1400_v56 = vpop.f32.mrf.mxu2  ;;  %v1360_v62 = vadd.f32 %v5147_v41, %v1347_v55  ;;  %v3971_v12 = vld [vmem:[#allocation5 + $0x20] sm:$0xf] }
  0xcc   :  { %v3972_v17 = vor.u32 %v4795_v13, %v3971_v12  ;;  %v4165_v56 = vld [vmem:[#allocation5 + $0x1b0] sm:$0xf0]  ;;  %v4833_v13 = vld [vmem:[#allocation5 + $0x164] sm:$0xf] }
  0xcd   :  { %1629 = vmatpush.bf16.msra.mxu3 %v3580_v8  ;;  %1642 = vmatpush.bf16.msra.mxu2 %v3708_v10  ;;  %v1373_v0 = vadd.f32 %v1372_v51, %v1360_v62  ;;  %v3988_v10 = vor.u32 %v4799_v2, %v3987_v1  ;;  %v4809_v51 = vld [vmem:[#allocation5 + $0xa4] sm:$0xf]  ;;  %v4276_v62 = vor.u32 %v4871_v59, %v4275_v29 }
  0xce   :  { %1618 = vmatmul.bf16.vlgmr.msrb.gmra.mxu1 %v5095_v53  ;;  %v4036_v53 = vor.u32 %v4811_v43, %v4035_v42  ;;  %v4813_v42 = vld [vmem:[#allocation5 + $0xc4] sm:$0xf]  ;;  %v4053_v43 = vld [vmem:[#allocation5 + $0xd0] sm:$0xf0] }
  0xcf   :  { %1669 = vmatpush.bf16.msra.mxu1 %v3948_v21  ;;  %1656 = vmatpush.bf16.msra.mxu0 %v3820_v9  ;;  %v4100_v21 = vor.u32 %v4827_v16, %v4099_v15  ;;  %v4849_v9 = vld [vmem:[#allocation5 + $0x1e4] sm:$0xf]  ;;  %v4056_v20 = vor.u32 %v4813_v42, %v4053_v43  ;;  %v4243_v16 = vld [vmem:[#allocation5 + $0x240] sm:$0xf] }
  0xd0   :  { %v4789_v42 = vld [vmem:[#allocation5 + $0x4] sm:$0xf] }
  0xd1   :  { %1630 = vmatpush.bf16.msra.mxu3 %v3564_v26  ;;  %1643 = vmatpush.bf16.msra.mxu2 %v3692_v27  ;;  %v4083_v26 = vld [vmem:[#allocation5 + $0x100] sm:$0xf]  ;;  %v4823_v27 = vld [vmem:[#allocation5 + $0x10c] sm:$0xf0] }
  0xd2   :  { %1657 = vmatmul.bf16.vlgmr.msra.gmra.mxu0 %v5119_v39  ;;  %v4835_v39 = vld [vmem:[#allocation5 + $0x16c] sm:$0xf0]  ;;  %v4084_v37 = vor.u32 %v4823_v27, %v4083_v26 }
  0xd3   :  { %2474 = vmatpush.bf16.msrb.mxu1 %v4196_v32  ;;  %v4132_v3 = vor.u32 %v4835_v39, %v4131_v61  ;;  %v5165_v35 = vpop.f32.mrf.mxu3  ;;  %v1374_v7 = vpop.f32.mrf.mxu0  ;;  %v4021_v61 = vld [vmem:[#allocation5 + $0x90] sm:$0xf0] }
  0xd4   :  { %1631 = vmatmul.bf16.vlgmr.msra.gmra.mxu3 %v5099_v60  ;;  %1644 = vmatmul.bf16.vlgmr.msra.gmra.mxu2 %v5117_v34  ;;  %v1385_v60 = vpop.f32.mrf.mxu1  ;;  %v4148_v34 = vor.u32 %v4839_v54, %v4147_v52  ;;  %v4037_v52 = vld [vmem:[#allocation5 + $0xb0] sm:$0xf0]  ;;  %v4184_v54 = vor.u32 %v4845_v46, %v4181_v47  ;;  %v1412_v18 = vadd.f32 %v5165_v35, %v296_v5  ;;  %v4855_v46 = vld [vmem:[#allocation5 + $0x20c] sm:$0xf0]  ;;  %v4075_v47 = vld [vmem:[#allocation5 + $0xe8] sm:$0xf] }
  0xd5   :  { %2461 = vmatpush.bf16.msrb.mxu3 %v4068_v28  ;;  %v1386_v41 = vadd.f32 %v1385_v60, %v1373_v0  ;;  %v4324_v28 = vor.u32 %v4883_v23, %v4323_v22  ;;  %v4841_v60 = vld [vmem:[#allocation5 + $0x1a4] sm:$0xf]  ;;  %v4149_v0 = vld [vmem:[#allocation5 + $0x190] sm:$0xf0] }
  0xd6   :  { %v4168_v39 = vor.u32 %v4841_v60, %v4165_v56  ;;  %v4829_v23 = vld [vmem:[#allocation5 + $0x144] sm:$0xf] }
  0xd7   :  { %2475 = vmatpush.bf16.msrb.mxu1 %v4180_v44  ;;  %v5169_v11 = vpop.f32.mrf.mxu2  ;;  %v1399_v57 = vadd.f32 %v5157_v38, %v1386_v41  ;;  %2487 = vmatpush.bf16.msrb.mxu2 %v4324_v28  ;;  %v4307_v38 = vld [vmem:[#allocation5 + $0x2c0] sm:$0xf]  ;;  %v4200_v44 = vor.u32 %v4849_v9, %v4197_v30  ;;  %v4859_v9 = vld [vmem:[#allocation5 + $0x22c] sm:$0xf0] }
  0xd8   :  { %v4227_v28 = vld [vmem:[#allocation5 + $0x220] sm:$0xf]  ;;  %v1425_v30 = vadd.f32 %v5169_v11, %v1412_v18  ;;  %v4203_v18 = vld [vmem:[#allocation5 + $0x1e8] sm:$0xf] }
  0xd9   :  { %2462 = vmatpush.bf16.msrb.mxu3 %v4052_v40  ;;  %v1675_v33 = vmax.f32 %v1399_v57, 0.0  ;;  %v4879_v40 = vld [vmem:[#allocation5 + $0x2cc] sm:$0xf0]  ;;  %v3989_v57 = vld [vmem:[#allocation5 + $0x50] sm:$0xf0] }
  0xda   :  { %v4308_v45 = vor.u32 %v4879_v40, %v4307_v38  ;;  %v3992_v27 = vor.u32 %v4797_v19, %v3989_v57  ;;  %v4101_v38 = vld [vmem:[#allocation5 + $0x130] sm:$0xf0]  ;;  %v4852_v19 = vld [vmem:[#allocation5 + $0x1f4] sm:$0xf0] }
  0xdb   :  { %2476 = vmatpush.bf16.msrb.mxu1 %v4164_v50  ;;  %v1413_v24 = vpop.f32.mrf.mxu3  ;;  %v4875_v50 = vld [vmem:[#allocation5 + $0x2ac] sm:$0xf0] }
  0xdc   :  { %v1387_v8 = vpop.f32.mrf.mxu1  ;;  %2488 = vmatpush.bf16.msrb.mxu2 %v4308_v45  ;;  %v4292_v55 = vor.u32 %v4875_v50, %v4291_v49  ;;  %v4117_v24 = vld [vmem:[#allocation5 + $0x150] sm:$0xf0]  ;;  %v4211_v45 = vld [vmem:[#allocation5 + $0x200] sm:$0xf]  ;;  %v4881_v49 = vld [vmem:[#allocation5 + $0x2e4] sm:$0xf] }
  0xdd   :  { %2463 = vmatpush.bf16.msrb.mxu3 %v4036_v53  ;;  %v5172_v53 = vpack.c.bf16 %v1675_v33, %v1675_v33  ;;  %v4801_v8 = vld [vmem:[#allocation5 + $0x64] sm:$0xf]  ;;  %v4120_v35 = vor.u32 %v4829_v23, %v4117_v24  ;;  %v4212_v11 = vor.u32 %v4855_v46, %v4211_v45  ;;  %v4325_v50 = vld [vmem:[#allocation5 + $0x2f0] sm:$0xf0]  ;;  %v4808_v23 = vld [vmem:[#allocation5 + $0x94] sm:$0xf0] }
  0xde   :  { %3952 = vmatmul.msk.bf16.vlgmr.msra.gmra.mxu1 %vm1307_vm0, %v5110_v48  ;;  %v4817_v48 = vld [vmem:[#allocation5 + $0xe4] sm:$0xf]  ;;  %v4328_v60 = vor.u32 %v4881_v49, %v4325_v50  ;;  %v4403_v46 = vld [vmem:[#allocation5 + $0x380] sm:$0xf] }
  0xdf   :  { %2477 = vmatpush.bf16.msrb.mxu1 %v4148_v34  ;;  %v1426_v32 = vpop.f32.mrf.mxu2  ;;  %v4072_v36 = vor.u32 %v4817_v48, %v4069_v25  ;;  %v4805_v34 = vld [vmem:[#allocation5 + $0x84] sm:$0xf] }
  0xe0   :  { %2489 = vmatpush.bf16.msrb.mxu2 %v4292_v55  ;;  %v4024_v2 = vor.u32 %v4805_v34, %v4021_v61  ;;  %v3973_v32 = vld [vmem:[#allocation5 + $0x30] sm:$0xf0]  ;;  %v4059_v61 = vld [vmem:[#allocation5 + $0xc8] sm:$0xf]  ;;  %v4869_v24 = vld [vmem:[#allocation5 + $0x284] sm:$0xf] }
  0xe1   :  { %2464 = vmatpush.bf16.msrb.mxu3 %v4020_v58  ;;  %v4040_v58 = vor.u32 %v4809_v51, %v4037_v52  ;;  %v4820_v52 = vld [vmem:[#allocation5 + $0xf4] sm:$0xf0]  ;;  %v4085_v55 = vld [vmem:[#allocation5 + $0x110] sm:$0xf0] }
  0xe2   :  { %v4076_v34 = vor.u32 %v4820_v52, %v4075_v47  ;;  %v4903_v47 = vld [vmem:[#allocation5 + $0x38c] sm:$0xf0]  ;;  %v3995_v52 = vld [vmem:[#allocation5 + $0x48] sm:$0xf] }
  0xe3   :  { %2478 = vmatpush.bf16.msrb.mxu1 %v4132_v3  ;;  %v4259_v3 = vld [vmem:[#allocation5 + $0x260] sm:$0xf]  ;;  %v4404_v49 = vor.u32 %v4903_v47, %v4403_v46  ;;  %v4913_v46 = vld [vmem:[#allocation5 + $0x3e4] sm:$0xf]  ;;  %v4453_v47 = vld [vmem:[#allocation5 + $0x3f0] sm:$0xf0] }
  0xe4   :  { %2490 = vmatpush.bf16.msrb.mxu2 %v4276_v62  ;;  %v4260_v12 = vor.u32 %v4867_v4, %v4259_v3  ;;  %v4877_v62 = vld [vmem:[#allocation5 + $0x2c4] sm:$0xf]  ;;  %v4915_v3 = vld [vmem:[#allocation5 + $0x3ec] sm:$0xf0] }
  0xe5   :  { %2465 = vmatpush.bf16.msrb.mxu3 %v4004_v63  ;;  %v4837_v63 = vld [vmem:[#allocation5 + $0x184] sm:$0xf] }
  0xe6   :  { %v4152_v41 = vor.u32 %v4837_v63, %v4149_v0  ;;  %v4309_v63 = vld [vmem:[#allocation5 + $0x2d0] sm:$0xf0]  ;;  %v4816_v0 = vld [vmem:[#allocation5 + $0xd4] sm:$0xf0] }
  0xe7   :  { %2479 = vmatpush.bf16.msrb.mxu1 %v4116_v14  ;;  %v4133_v14 = vld [vmem:[#allocation5 + $0x170] sm:$0xf0] }
  0xe8   :  { %2491 = vmatpush.bf16.msrb.mxu2 %v4260_v12  ;;  %v4136_v48 = vor.u32 %v4833_v13, %v4133_v14  ;;  %v4812_v13 = vld [vmem:[#allocation5 + $0xb4] sm:$0xf0] }
  0xe9   :  { %2466 = vmatpush.bf16.msrb.mxu3 %v3988_v10  ;;  %v4005_v10 = vld [vmem:[#allocation5 + $0x70] sm:$0xf0] }
  0xea   :  { %v4008_v15 = vor.u32 %v4801_v8, %v4005_v10  ;;  %v4043_v8 = vld [vmem:[#allocation5 + $0xa8] sm:$0xf]  ;;  %v4873_v10 = vld [vmem:[#allocation5 + $0x2a4] sm:$0xf] }
  0xeb   :  { %2480 = vmatpush.bf16.msrb.mxu1 %v4100_v21  ;;  %v1437_v1 = vpop.f32.mrf.mxu0  ;;  %v1450_v7 = vpop.f32.mrf.mxu1 }
  0xec   :  { %v1438_v40 = vadd.f32 %v1437_v1, %v1425_v30  ;;  %v4312_v1 = vor.u32 %v4877_v62, %v4309_v63  ;;  %v4187_v30 = vld [vmem:[#allocation5 + $0x1c8] sm:$0xf] }
  0xed   :  { %2467 = vmatpush.bf16.msrb.mxu3 %v3972_v17  ;;  %v4863_v17 = vld [vmem:[#allocation5 + $0x24c] sm:$0xf0]  ;;  %v3979_v63 = vld [vmem:[#allocation5 + $0x28] sm:$0xf] }
  0xee   :  { %v4244_v21 = vor.u32 %v4863_v17, %v4243_v16  ;;  %v1451_v56 = vadd.f32 %v1450_v7, %v1438_v40  ;;  %v4060_v7 = vor.u32 %v4816_v0, %v4059_v61  ;;  %v4911_v16 = vld [vmem:[#allocation5 + $0x3cc] sm:$0xf0]  ;;  %v4840_v61 = vld [vmem:[#allocation5 + $0x194] sm:$0xf0]  ;;  %v4857_v0 = vld [vmem:[#allocation5 + $0x224] sm:$0xf] }
  0xef   :  { %2481 = vmatpush.bf16.msrb.mxu1 %v4084_v37  ;;  %v4825_v37 = vld [vmem:[#allocation5 + $0x124] sm:$0xf] }
  0xf0   :  { %2492 = vmatpush.bf16.msrb.mxu2 %v4244_v21 }
  0xf1   :  { %2468 = vmatpush.bf16.msrb.mxu3 %v3956_v31  ;;  %v4793_v31 = vld [vmem:[#allocation5 + $0x24] sm:$0xf] }
  0xf2   :  { %v3976_v43 = vor.u32 %v4793_v31, %v3973_v32  ;;  %v4848_v31 = vld [vmem:[#allocation5 + $0x1d4] sm:$0xf0] }
  0xf3   :  { %2526 = vmatpush.bf16.msra.mxu1 %v4200_v44  ;;  %v1463_v22 = vpop.f32.mrf.mxu3  ;;  %v1439_v25 = vpop.f32.mrf.mxu0  ;;  %v3957_v44 = vld [vmem:[#allocation5 + $0x10] sm:$0xf0] }
  0xf4   :  { %2469 = vmatmul.bf16.vlgmr.msrb.gmra.mxu3 %v5172_v53  ;;  %v1452_v33 = vpop.f32.mrf.mxu1  ;;  %v1464_v59 = vadd.f32 %v1463_v22, %v1451_v56  ;;  %v4044_v22 = vor.u32 %v4812_v13, %v4043_v8  ;;  %v4204_v25 = vor.u32 %v4852_v19, %v4203_v18  ;;  %v4800_v56 = vld [vmem:[#allocation5 + $0x54] sm:$0xf0]  ;;  %v4371_v8 = vld [vmem:[#allocation5 + $0x340] sm:$0xf]  ;;  %v4853_v19 = vld [vmem:[#allocation5 + $0x204] sm:$0xf] }
  0xf5   :  { %2513 = vmatpush.bf16.msra.mxu3 %v4072_v36  ;;  %v4228_v36 = vor.u32 %v4859_v9, %v4227_v28  ;;  %v4907_v28 = vld [vmem:[#allocation5 + $0x3ac] sm:$0xf0]  ;;  %v3996_v62 = vor.u32 %v4800_v56, %v3995_v52  ;;  %v4792_v18 = vld [vmem:[#allocation5 + $0x14] sm:$0xf0]  ;;  %v4045_v56 = vld [vmem:[#allocation5 + $0xb8] sm:$0xf0] }
  0xf7   :  { %2527 = vmatpush.bf16.msra.mxu1 %v4184_v54  ;;  %v1476_v26 = vpop.f32.mrf.mxu2  ;;  %2493 = vmatpush.bf16.msrb.mxu2 %v4228_v36  ;;  %v4821_v54 = vld [vmem:[#allocation5 + $0x104] sm:$0xf]  ;;  %v4011_v36 = vld [vmem:[#allocation5 + $0x68] sm:$0xf] }
  0xf8   :  { %v1477_v5 = vadd.f32 %v1476_v26, %v1464_v59  ;;  %v4277_v26 = vld [vmem:[#allocation5 + $0x290] sm:$0xf0]  ;;  %v4899_v59 = vld [vmem:[#allocation5 + $0x36c] sm:$0xf0] }
  0xf9   :  { %2514 = vmatpush.bf16.msra.mxu3 %v4056_v20  ;;  %v4104_v20 = vor.u32 %v4825_v37, %v4101_v38  ;;  %v4280_v32 = vor.u32 %v4869_v24, %v4277_v26  ;;  %v4865_v37 = vld [vmem:[#allocation5 + $0x264] sm:$0xf]  ;;  %v4261_v38 = vld [vmem:[#allocation5 + $0x270] sm:$0xf0]  ;;  %v4891_v24 = vld [vmem:[#allocation5 + $0x32c] sm:$0xf0] }
  0xfa   :  { %v4264_v45 = vor.u32 %v4865_v37, %v4261_v38  ;;  %v4818_v26 = vld [vmem:[#allocation5 + $0xec] sm:$0xf] }
  0xfb   :  { %2528 = vmatpush.bf16.msra.mxu1 %v4168_v39  ;;  %v1465_v51 = vpop.f32.mrf.mxu3  ;;  %2494 = vmatpush.bf16.msrb.mxu2 %v4212_v11  ;;  %v4088_v39 = vor.u32 %v4821_v54, %v4085_v55  ;;  %v4844_v11 = vld [vmem:[#allocation5 + $0x1b4] sm:$0xf0]  ;;  %v4861_v54 = vld [vmem:[#allocation5 + $0x244] sm:$0xf]  ;;  %v4245_v55 = vld [vmem:[#allocation5 + $0x250] sm:$0xf0] }
  0xfd   :  { %2515 = vmatpush.bf16.msra.mxu3 %v4040_v58  ;;  %v3960_v58 = vor.u32 %v4789_v42, %v3957_v44  ;;  %v4804_v44 = vld [vmem:[#allocation5 + $0x74] sm:$0xf0] }
  0xfe   :  { %v4012_v51 = vor.u32 %v4804_v44, %v4011_v36  ;;  %v4814_v36 = vld [vmem:[#allocation5 + $0xcc] sm:$0xf]  ;;  %v4061_v44 = vld [vmem:[#allocation5 + $0xd8] sm:$0xf0] }
  0xff   :  { %2529 = vmatpush.bf16.msra.mxu1 %v4152_v41  ;;  %v1478_v29 = vpop.f32.mrf.mxu2  ;;  %2539 = vmatpush.bf16.msra.mxu2 %v4328_v60  ;;  %v4293_v41 = vld [vmem:[#allocation5 + $0x2b0] sm:$0xf0]  ;;  %v4064_v52 = vor.u32 %v4814_v36, %v4061_v44  ;;  %v3981_v44 = vld [vmem:[#allocation5 + $0x38] sm:$0xf0] }
 0x100   :  { %v4296_v14 = vor.u32 %v4873_v10, %v4293_v41  ;;  %v4387_v29 = vld [vmem:[#allocation5 + $0x360] sm:$0xf]  ;;  %v4895_v10 = vld [vmem:[#allocation5 + $0x34c] sm:$0xf0]  ;;  %v4139_v41 = vld [vmem:[#allocation5 + $0x168] sm:$0xf] }
 0x101   :  { %2516 = vmatpush.bf16.msra.mxu3 %v4024_v2  ;;  %v4451_v2 = vld [vmem:[#allocation5 + $0x3e0] sm:$0xf]  ;;  %v4372_v13 = vor.u32 %v4895_v10, %v4371_v8  ;;  %v4846_v10 = vld [vmem:[#allocation5 + $0x1cc] sm:$0xf] }
 0x102   :  { %v4452_v4 = vor.u32 %v4915_v3, %v4451_v2 }
 0x103   :  { %2530 = vmatpush.bf16.msra.mxu1 %v4136_v48  ;;  %2540 = vmatpush.bf16.msra.mxu2 %v4312_v1  ;;  %v1489_v12 = vpop.f32.mrf.mxu3  ;;  %v4027_v48 = vld [vmem:[#allocation5 + $0x88] sm:$0xf]  ;;  %v4229_v1 = vld [vmem:[#allocation5 + $0x230] sm:$0xf0] }
 0x104   :  { %2500 = vmatpush.bf16.msrb.mxu0 %v4452_v4  ;;  %v1490_v17 = vadd.f32 %v1489_v12, %v1477_v5  ;;  %v4028_v33 = vor.u32 %v4808_v23, %v4027_v48  ;;  %v4796_v5 = vld [vmem:[#allocation5 + $0x34] sm:$0xf0]  ;;  %v4355_v23 = vld [vmem:[#allocation5 + $0x320] sm:$0xf] }
 0x105   :  { %2517 = vmatpush.bf16.msra.mxu3 %v4008_v15  ;;  %v4435_v15 = vld [vmem:[#allocation5 + $0x3c0] sm:$0xf]  ;;  %v4836_v12 = vld [vmem:[#allocation5 + $0x174] sm:$0xf0] }
 0x106   :  { %v4436_v57 = vor.u32 %v4911_v16, %v4435_v15  ;;  %v1676_v21 = vmax.f32 %v1490_v17, 0.0  ;;  %v3963_v15 = vld [vmem:[#allocation5 + $0x8] sm:$0xf]  ;;  %v3980_v17 = vor.u32 %v4796_v5, %v3979_v63  ;;  %v4140_v48 = vor.u32 %v4836_v12, %v4139_v41  ;;  %v4905_v5 = vld [vmem:[#allocation5 + $0x3a4] sm:$0xf] }
 0x107   :  { %2531 = vmatpush.bf16.msra.mxu1 %v4120_v35  ;;  %2541 = vmatpush.bf16.msra.mxu2 %v4296_v14 }
 0x108   :  { %2501 = vmatpush.bf16.msrb.mxu0 %v4436_v57  ;;  %v5179_v9 = vpack.c.bf16 %v1676_v21, %v1676_v21  ;;  %v4213_v57 = vld [vmem:[#allocation5 + $0x210] sm:$0xf0]  ;;  %v4123_v21 = vld [vmem:[#allocation5 + $0x148] sm:$0xf] }
 0x109   :  { %2518 = vmatpush.bf16.msra.mxu3 %v3992_v27  ;;  %v4419_v27 = vld [vmem:[#allocation5 + $0x3a0] sm:$0xf] }
 0x10a   :  { %v4420_v35 = vor.u32 %v4907_v28, %v4419_v27  ;;  %2482 = vmatmul.bf16.vlgmr.msrb.gmra.mxu1 %v5179_v9  ;;  %v4077_v27 = vld [vmem:[#allocation5 + $0xf8] sm:$0xf0]  ;;  %v4356_v28 = vor.u32 %v4891_v24, %v4355_v23  ;;  %v4798_v23 = vld [vmem:[#allocation5 + $0x4c] sm:$0xf] }
 0x10b   :  { %2532 = vmatpush.bf16.msra.mxu1 %v4104_v20  ;;  %v1491_v40 = vpop.f32.mrf.mxu3  ;;  %v5182_v42 = vpop.f32.mrf.mxu0  ;;  %2542 = vmatpush.bf16.msra.mxu2 %v4280_v32  ;;  %v4171_v20 = vld [vmem:[#allocation5 + $0x1a8] sm:$0xf]  ;;  %v4828_v32 = vld [vmem:[#allocation5 + $0x134] sm:$0xf0] }
 0x10c   :  { %2502 = vmatpush.bf16.msrb.mxu0 %v4420_v35  ;;  %v5184_v50 = vpop.f32.mrf.mxu1  ;;  %v4172_v60 = vor.u32 %v4844_v11, %v4171_v20  ;;  %v4339_v40 = vld [vmem:[#allocation5 + $0x300] sm:$0xf]  ;;  %v297_v20 = vperm.slane %v5152_v6, 2 }
 0x10d   :  { %2519 = vmatpush.bf16.msra.mxu3 %v3976_v43  ;;  %v4188_v43 = vor.u32 %v4848_v31, %v4187_v30  ;;  %v3964_v30 = vor.u32 %v4792_v18, %v3963_v15  ;;  %v4107_v31 = vld [vmem:[#allocation5 + $0x128] sm:$0xf]  ;;  %v4802_v15 = vld [vmem:[#allocation5 + $0x6c] sm:$0xf]  ;;  %v4901_v18 = vld [vmem:[#allocation5 + $0x384] sm:$0xf] }
 0x10f   :  { %2533 = vmatpush.bf16.msra.mxu1 %v4088_v39  ;;  %2543 = vmatpush.bf16.msra.mxu2 %v4264_v45  ;;  %v4388_v39 = vor.u32 %v4899_v59, %v4387_v29  ;;  %v4437_v29 = vld [vmem:[#allocation5 + $0x3d0] sm:$0xf0]  ;;  %v1503_v59 = vadd.f32 %v5184_v50, %v297_v20  ;;  %v4189_v50 = vld [vmem:[#allocation5 + $0x1d8] sm:$0xf0]  ;;  %v4834_v20 = vld [vmem:[#allocation5 + $0x16c] sm:$0xf] }
 0x110   :  { %2503 = vmatpush.bf16.msrb.mxu0 %v4404_v49  ;;  %v4456_v49 = vor.u32 %v4913_v46, %v4453_v47  ;;  %v4373_v46 = vld [vmem:[#allocation5 + $0x350] sm:$0xf0] }
 0x111   :  { %2520 = vmatpush.bf16.msra.mxu3 %v3960_v58  ;;  %v4248_v58 = vor.u32 %v4861_v54, %v4245_v55  ;;  %v4091_v54 = vld [vmem:[#allocation5 + $0x108] sm:$0xf]  ;;  %v4824_v55 = vld [vmem:[#allocation5 + $0x114] sm:$0xf0] }
 0x113   :  { %2578 = vmatpush.bf16.msrb.mxu1 %v4204_v25  ;;  %v1530_v3 = vpop.f32.mrf.mxu0  ;;  %2544 = vmatpush.bf16.msra.mxu2 %v4248_v58  ;;  %v4832_v25 = vld [vmem:[#allocation5 + $0x154] sm:$0xf0]  ;;  %v4909_v58 = vld [vmem:[#allocation5 + $0x3c4] sm:$0xf] }
 0x114   :  { %2521 = vmatmul.bf16.vlgmr.msra.gmra.mxu3 %v5172_v53  ;;  %2504 = vmatpush.bf16.msrb.mxu0 %v4388_v39  ;;  %v1504_v16 = vpop.f32.mrf.mxu1  ;;  %v4124_v35 = vor.u32 %v4832_v25, %v4123_v21  ;;  %v4440_v39 = vor.u32 %v4909_v58, %v4437_v29  ;;  %v4173_v21 = vld [vmem:[#allocation5 + $0x1b8] sm:$0xf0]  ;;  %v4889_v29 = vld [vmem:[#allocation5 + $0x324] sm:$0xf] }
 0x115   :  { %2565 = vmatpush.bf16.msrb.mxu3 %v4076_v34  ;;  %v4155_v34 = vld [vmem:[#allocation5 + $0x188] sm:$0xf]  ;;  %v4192_v16 = vor.u32 %v4846_v10, %v4189_v50  ;;  %v3997_v25 = vld [vmem:[#allocation5 + $0x58] sm:$0xf0]  ;;  %v4341_v10 = vld [vmem:[#allocation5 + $0x310] sm:$0xf0] }
 0x116   :  { %v4156_v4 = vor.u32 %v4840_v61, %v4155_v34  ;;  %v4850_v34 = vld [vmem:[#allocation5 + $0x1ec] sm:$0xf]  ;;  %v4205_v61 = vld [vmem:[#allocation5 + $0x1f8] sm:$0xf0] }
 0x117   :  { %2579 = vmatpush.bf16.msrb.mxu1 %v4188_v43  ;;  %v5186_v2 = vpop.f32.mrf.mxu3  ;;  %v5188_v14 = vpop.f32.mrf.mxu2  ;;  %v4887_v43 = vld [vmem:[#allocation5 + $0x30c] sm:$0xf0]  ;;  %v4208_v3 = vor.u32 %v4850_v34, %v4205_v61  ;;  %v3965_v58 = vld [vmem:[#allocation5 + $0x18] sm:$0xf0]  ;;  %v4830_v61 = vld [vmem:[#allocation5 + $0x14c] sm:$0xf] }
 0x118   :  { %2505 = vmatpush.bf16.msrb.mxu0 %v4372_v13  ;;  %v4340_v45 = vor.u32 %v4887_v43, %v4339_v40  ;;  %v1516_v8 = vadd.f32 %v5186_v2, %v1503_v59  ;;  %v4357_v59 = vld [vmem:[#allocation5 + $0x330] sm:$0xf0]  ;;  %v4826_v50 = vld [vmem:[#allocation5 + $0x12c] sm:$0xf] }
 0x119   :  { %2566 = vmatpush.bf16.msrb.mxu3 %v4060_v7  ;;  %v4232_v7 = vor.u32 %v4857_v0, %v4229_v1  ;;  %v4806_v0 = vld [vmem:[#allocation5 + $0x8c] sm:$0xf] }
 0x11a   :  { %2534 = vmatmul.bf16.vlgmr.msra.gmra.mxu1 %v5179_v9 }
 0x11b   :  { %2580 = vmatpush.bf16.msrb.mxu1 %v4172_v60  ;;  %2545 = vmatpush.bf16.msra.mxu2 %v4232_v7  ;;  %v5191_v38 = vpop.f32.mrf.mxu0  ;;  %v4810_v60 = vld [vmem:[#allocation5 + $0xac] sm:$0xf]  ;;  %v4421_v7 = vld [vmem:[#allocation5 + $0x3b0] sm:$0xf0] }
 0x11c   :  { %2506 = vmatpush.bf16.msrb.mxu0 %v4356_v28  ;;  %v4048_v63 = vor.u32 %v4810_v60, %v4045_v56  ;;  %v4424_v41 = vor.u32 %v4905_v5, %v4421_v7  ;;  %v4790_v60 = vld [vmem:[#allocation5 + $0xc] sm:$0xf] }
 0x11d   :  { %2567 = vmatpush.bf16.msrb.mxu3 %v4044_v22  ;;  %v4216_v22 = vor.u32 %v4853_v19, %v4213_v57  ;;  %v4405_v19 = vld [vmem:[#allocation5 + $0x390] sm:$0xf0]  ;;  %v1529_v57 = vadd.f32 %v5182_v42, %v1516_v8  ;;  %v4885_v8 = vld [vmem:[#allocation5 + $0x304] sm:$0xf] }
 0x11e   :  { %v4408_v2 = vor.u32 %v4901_v18, %v4405_v19  ;;  %v4822_v19 = vld [vmem:[#allocation5 + $0x10c] sm:$0xf] }
 0x11f   :  { %2581 = vmatpush.bf16.msrb.mxu1 %v4156_v4  ;;  %v1517_v37 = vpop.f32.mrf.mxu3  ;;  %2546 = vmatpush.bf16.msra.mxu2 %v4216_v22  ;;  %v1543_v11 = vpop.f32.mrf.mxu2  ;;  %v4029_v4 = vld [vmem:[#allocation5 + $0x98] sm:$0xf0]  ;;  %v1542_v28 = vadd.f32 %v5188_v14, %v1529_v57 }
 0x120   :  { %2507 = vmatpush.bf16.msrb.mxu0 %v4340_v45  ;;  %v4032_v13 = vor.u32 %v4806_v0, %v4029_v4  ;;  %v4794_v37 = vld [vmem:[#allocation5 + $0x2c] sm:$0xf]  ;;  %v4893_v45 = vld [vmem:[#allocation5 + $0x344] sm:$0xf]  ;;  %v4141_v14 = vld [vmem:[#allocation5 + $0x178] sm:$0xf0] }
 0x121   :  { %2568 = vmatpush.bf16.msrb.mxu3 %v4028_v33  ;;  %v4080_v33 = vor.u32 %v4818_v26, %v4077_v27  ;;  %v4897_v26 = vld [vmem:[#allocation5 + $0x364] sm:$0xf]  ;;  %v4389_v27 = vld [vmem:[#allocation5 + $0x370] sm:$0xf0]  ;;  %v4144_v56 = vor.u32 %v4834_v20, %v4141_v14  ;;  %v4880_v4 = vld [vmem:[#allocation5 + $0x2d4] sm:$0xf0] }
 0x122   :  { %v4392_v42 = vor.u32 %v4897_v26, %v4389_v27  ;;  %v4093_v57 = vld [vmem:[#allocation5 + $0x118] sm:$0xf0]  ;;  %v4868_v26 = vld [vmem:[#allocation5 + $0x274] sm:$0xf0]  ;;  %v4882_v14 = vld [vmem:[#allocation5 + $0x2ec] sm:$0xf] }
 0x123   :  { %2582 = vmatpush.bf16.msrb.mxu1 %v4140_v48  ;;  %v1582_v1 = vpop.f32.mrf.mxu0  ;;  %v4842_v48 = vld [vmem:[#allocation5 + $0x1ac] sm:$0xf] }
 0x124   :  { %2552 = vmatpush.bf16.msra.mxu0 %v4456_v49  ;;  %v4176_v24 = vor.u32 %v4842_v48, %v4173_v21  ;;  %v4376_v49 = vor.u32 %v4893_v45, %v4373_v46  ;;  %v4283_v21 = vld [vmem:[#allocation5 + $0x288] sm:$0xf] }
 0x125   :  { %2569 = vmatpush.bf16.msrb.mxu3 %v4012_v51  ;;  %v4108_v51 = vor.u32 %v4828_v32, %v4107_v31  ;;  %v4157_v31 = vld [vmem:[#allocation5 + $0x198] sm:$0xf0] }
 0x127   :  { %2583 = vmatpush.bf16.msrb.mxu1 %v4124_v35 }
 0x128   :  { %2553 = vmatpush.bf16.msra.mxu0 %v4440_v39  ;;  %v4125_v39 = vld [vmem:[#allocation5 + $0x158] sm:$0xf0] }
 0x129   :  { %2570 = vmatpush.bf16.msrb.mxu3 %v3996_v62  ;;  %v4092_v62 = vor.u32 %v4824_v55, %v4091_v54  ;;  %v4331_v54 = vld [vmem:[#allocation5 + $0x2e8] sm:$0xf]  ;;  %v4884_v55 = vld [vmem:[#allocation5 + $0x2f4] sm:$0xf0]  ;;  %v4128_v5 = vor.u32 %v4830_v61, %v4125_v39 }
 0x12a   :  { %v4332_v0 = vor.u32 %v4884_v55, %v4331_v54  ;;  %v4878_v55 = vld [vmem:[#allocation5 + $0x2cc] sm:$0xf] }
 0x12b   :  { %2584 = vmatpush.bf16.msrb.mxu1 %v4108_v51  ;;  %v1554_v12 = vpop.f32.mrf.mxu1 }
 0x12c   :  { %2554 = vmatpush.bf16.msra.mxu0 %v4424_v41  ;;  %v1555_v35 = vadd.f32 %v1554_v12, %v1542_v28  ;;  %v4109_v41 = vld [vmem:[#allocation5 + $0x138] sm:$0xf0] }
 0x12d   :  { %2571 = vmatpush.bf16.msrb.mxu3 %v3980_v17  ;;  %v4013_v17 = vld [vmem:[#allocation5 + $0x78] sm:$0xf0]  ;;  %v4112_v18 = vor.u32 %v4826_v50, %v4109_v41  ;;  %v4427_v41 = vld [vmem:[#allocation5 + $0x3a8] sm:$0xf] }
 0x12e   :  { %v4016_v22 = vor.u32 %v4802_v15, %v4013_v17  ;;  %v4876_v17 = vld [vmem:[#allocation5 + $0x2b4] sm:$0xf0]  ;;  %v4285_v50 = vld [vmem:[#allocation5 + $0x298] sm:$0xf0] }
 0x12f   :  { %2585 = vmatpush.bf16.msrb.mxu1 %v4092_v62  ;;  %v5200_v32 = vpop.f32.mrf.mxu0 }
 0x130   :  { %2555 = vmatpush.bf16.msra.mxu0 %v4408_v2  ;;  %v4872_v2 = vld [vmem:[#allocation5 + $0x294] sm:$0xf0] }
 0x131   :  { %2572 = vmatpush.bf16.msrb.mxu3 %v3964_v30  ;;  %v4838_v30 = vld [vmem:[#allocation5 + $0x18c] sm:$0xf] }
 0x132   :  { %2586 = vmatmul.bf16.vlgmr.msrb.gmra.mxu1 %v5179_v9  ;;  %v4160_v43 = vor.u32 %v4838_v30, %v4157_v31  ;;  %v4251_v31 = vld [vmem:[#allocation5 + $0x248] sm:$0xf] }
 0x133   :  { %2630 = vmatpush.bf16.msra.mxu1 %v4208_v3  ;;  %v1556_v36 = vpop.f32.mrf.mxu1  ;;  %v4315_v3 = vld [vmem:[#allocation5 + $0x2c8] sm:$0xf] }
 0x134   :  { %2573 = vmatmul.bf16.vlgmr.msrb.gmra.mxu3 %v5172_v53  ;;  %2556 = vmatpush.bf16.msra.mxu0 %v4392_v42  ;;  %v4316_v15 = vor.u32 %v4880_v4, %v4315_v3  ;;  %v4860_v36 = vld [vmem:[#allocation5 + $0x234] sm:$0xf0]  ;;  %v4443_v3 = vld [vmem:[#allocation5 + $0x3c8] sm:$0xf] }
 0x135   :  { %2617 = vmatpush.bf16.msra.mxu3 %v4080_v33  ;;  %v4000_v33 = vor.u32 %v4798_v23, %v3997_v25  ;;  %v4096_v23 = vor.u32 %v4822_v19, %v4093_v57  ;;  %v4267_v25 = vld [vmem:[#allocation5 + $0x268] sm:$0xf]  ;;  %v4912_v4 = vld [vmem:[#allocation5 + $0x3d4] sm:$0xf0] }
 0x136   :  { %v4268_v30 = vor.u32 %v4868_v26, %v4267_v25  ;;  %v4904_v19 = vld [vmem:[#allocation5 + $0x394] sm:$0xf0]  ;;  %v4858_v26 = vld [vmem:[#allocation5 + $0x22c] sm:$0xf] }
 0x137   :  { %2631 = vmatpush.bf16.msra.mxu1 %v4192_v16  ;;  %v1567_v40 = vpop.f32.mrf.mxu3  ;;  %v1593_v11 = vpop.f32.mrf.mxu2  ;;  %v4299_v16 = vld [vmem:[#allocation5 + $0x2a8] sm:$0xf] }
 0x138   :  { %v1568_v47 = vadd.f32 %v1567_v40, %v1555_v35  ;;  %v1608_v62 = vpop.f32.mrf.mxu0  ;;  %2557 = vmatpush.bf16.msra.mxu0 %v4376_v49  ;;  %v4300_v48 = vor.u32 %v4876_v17, %v4299_v16  ;;  %v4866_v16 = vld [vmem:[#allocation5 + $0x26c] sm:$0xf]  ;;  %v4269_v17 = vld [vmem:[#allocation5 + $0x278] sm:$0xf0] }
 0x139   :  { %2618 = vmatpush.bf16.msra.mxu3 %v4064_v52  ;;  %v3984_v52 = vor.u32 %v4794_v37, %v3981_v44  ;;  %v4272_v57 = vor.u32 %v4866_v16, %v4269_v17 }
 0x13a   :  { %v1581_v51 = vadd.f32 %v5191_v38, %v1568_v47  ;;  %v3968_v38 = vor.u32 %v4790_v60, %v3965_v58  ;;  %v4219_v47 = vld [vmem:[#allocation5 + $0x208] sm:$0xf]  ;;  %v4317_v60 = vld [vmem:[#allocation5 + $0x2d8] sm:$0xf0] }
 0x13b   :  { %2632 = vmatpush.bf16.msra.mxu1 %v4176_v24  ;;  %v4284_v24 = vor.u32 %v4872_v2, %v4283_v21  ;;  %v4320_v39 = vor.u32 %v4878_v55, %v4317_v60  ;;  %v4862_v21 = vld [vmem:[#allocation5 + $0x24c] sm:$0xf]  ;;  %v4253_v2 = vld [vmem:[#allocation5 + $0x258] sm:$0xf0]  ;;  %v1811_v60 = vld [vmem:[%s5421_s5] sm:$0xf] }
 0x13c   :  { %v1677_v34 = vmax.f32 %v1581_v51, 0.0  ;;  %v4413_v55 = vld [vmem:[#allocation5 + $0x398] sm:$0xf0] }
 0x13d   :  { %2619 = vmatpush.bf16.msra.mxu3 %v4048_v63  ;;  %v4360_v63 = vor.u32 %v4889_v29, %v4357_v59  ;;  %v4459_v29 = vld [vmem:[#allocation5 + $0x3e8] sm:$0xf]  ;;  %v4916_v59 = vld [vmem:[#allocation5 + $0x3f4] sm:$0xf0] }
 0x13e   :  { %v5203_v1 = vpack.c.bf16 %v1677_v34, %v1677_v34  ;;  %v4460_v62 = vor.u32 %v4916_v59, %v4459_v29  ;;  %v4397_v29 = vld [vmem:[#allocation5 + $0x378] sm:$0xf0] }
 0x13f   :  { %2633 = vmatpush.bf16.msra.mxu1 %v4160_v43  ;;  %v1569_v7 = vpop.f32.mrf.mxu3  ;;  %v1595_v12 = vpop.f32.mrf.mxu2  ;;  %2558 = vmatpush.bf16.msra.mxu0 %v4360_v63  ;;  %v4874_v63 = vld [vmem:[#allocation5 + $0x2ac] sm:$0xf] }
 0x140   :  { %2495 = vmatmul.bf16.vlgmr.msrb.gmra.mxu2 %v5203_v1  ;;  %v4908_v12 = vld [vmem:[#allocation5 + $0x3b4] sm:$0xf0] }
 0x141   :  { %2620 = vmatpush.bf16.msra.mxu3 %v4032_v13  ;;  %v4344_v13 = vor.u32 %v4885_v8, %v4341_v10  ;;  %2591 = vmatpush.bf16.msrb.mxu2 %v4332_v0  ;;  %v4301_v0 = vld [vmem:[#allocation5 + $0x2b8] sm:$0xf0]  ;;  %v4444_v8 = vor.u32 %v4912_v4, %v4443_v3  ;;  %v4870_v10 = vld [vmem:[#allocation5 + $0x28c] sm:$0xf] }
 0x143   :  { %2634 = vmatpush.bf16.msra.mxu1 %v4144_v56  ;;  %2559 = vmatpush.bf16.msra.mxu0 %v4344_v13  ;;  %v4288_v13 = vor.u32 %v4870_v10, %v4285_v50  ;;  %v4886_v10 = vld [vmem:[#allocation5 + $0x30c] sm:$0xf]  ;;  %v4349_v50 = vld [vmem:[#allocation5 + $0x318] sm:$0xf0] }
 0x144   :  { %v4352_v16 = vor.u32 %v4886_v10, %v4349_v50 }
 0x145   :  { %2621 = vmatpush.bf16.msra.mxu3 %v4016_v22  ;;  %2592 = vmatpush.bf16.msrb.mxu2 %v4316_v15  ;;  %v298_v22 = vperm.slane %v5152_v6, 3  ;;  %v4428_v15 = vor.u32 %v4908_v12, %v4427_v41 }
 0x147   :  { %2635 = vmatpush.bf16.msra.mxu1 %v4128_v5  ;;  %v1594_v27 = vadd.f32 %v1593_v11, %v298_v22  ;;  %v4333_v11 = vld [vmem:[#allocation5 + $0x2f8] sm:$0xf0]  ;;  %v4304_v5 = vor.u32 %v4874_v63, %v4301_v0  ;;  %v4395_v22 = vld [vmem:[#allocation5 + $0x368] sm:$0xf]  ;;  %v71_v0 = vstv %s70_s15 }
 0x148   :  { %4957 = vrcp.f32 %v71_v0  ;;  %v83_v17 = vand.u32 2147483648, %v71_v0  ;;  %vm77_vm1 = vweird.f32 %v71_v0 }
 0x149   :  { %2622 = vmatpush.bf16.msra.mxu3 %v4000_v33  ;;  %2593 = vmatpush.bf16.msrb.mxu2 %v4300_v48  ;;  %v1607_v42 = vadd.f32 %v5200_v32, %v1594_v27  ;;  %v4235_v33 = vld [vmem:[#allocation5 + $0x228] sm:$0xf]  ;;  %v4237_v27 = vld [vmem:[#allocation5 + $0x238] sm:$0xf0] }
 0x14a   :  { %v4236_v46 = vor.u32 %v4860_v36, %v4235_v33  ;;  %v4363_v33 = vld [vmem:[#allocation5 + $0x328] sm:$0xf]  ;;  %v4892_v36 = vld [vmem:[#allocation5 + $0x334] sm:$0xf0] }
 0x14b   :  { %2636 = vmatpush.bf16.msra.mxu1 %v4112_v18  ;;  %v1619_v28 = vpop.f32.mrf.mxu1  ;;  %v4411_v18 = vld [vmem:[#allocation5 + $0x388] sm:$0xf] }
 0x14c   :  { %v1620_v37 = vadd.f32 %v1619_v28, %v1607_v42  ;;  %v4412_v48 = vor.u32 %v4904_v19, %v4411_v18  ;;  %v4379_v28 = vld [vmem:[#allocation5 + $0x348] sm:$0xf]  ;;  %v81_v19 = vand.u32 2147483647, %v71_v0 }
 0x14d   :  { %2623 = vmatpush.bf16.msra.mxu3 %v3984_v52  ;;  %2594 = vmatpush.bf16.msrb.mxu2 %v4284_v24  ;;  %v4336_v52 = vor.u32 %v4882_v14, %v4333_v11  ;;  %v4256_v24 = vor.u32 %v4862_v21, %v4253_v2  ;;  %v4910_v14 = vld [vmem:[#allocation5 + $0x3cc] sm:$0xf]  ;;  %v4445_v11 = vld [vmem:[#allocation5 + $0x3d8] sm:$0xf0]  ;;  %v84_v21 = vor.u32 1.1754944e-38, %v83_v17 }
 0x14e   :  { %v4958_v41 = vpop.eup %4957  ;;  %vm82_vm4 = vcmp.eq.f32.partialorder %v81_v19, 8.507059e+37 }
 0x14f   :  { %2637 = vmatpush.bf16.msra.mxu1 %v4096_v23  ;;  %v1658_v6 = vpop.f32.mrf.mxu0  ;;  %v4900_v23 = vld [vmem:[#allocation5 + $0x374] sm:$0xf0]  ;;  %vm78_vm2 = vweird.f32 %v4958_v41 }
 0x150   :  { %2547 = vmatmul.bf16.vlgmr.msra.gmra.mxu2 %v5203_v1  ;;  %v4396_v25 = vor.u32 %v4900_v23, %v4395_v22  ;;  %vm79_vm3 = vmor %vm77_vm1, %vm78_vm2 }
 0x151   :  { %2624 = vmatpush.bf16.msra.mxu3 %v3968_v38  ;;  %2595 = vmatpush.bf16.msrb.mxu2 %v4268_v30  ;;  %v4896_v30 = vld [vmem:[#allocation5 + $0x354] sm:$0xf0] }
 0x152   :  { %2638 = vmatmul.bf16.vlgmr.msra.gmra.mxu1 %v5179_v9  ;;  %v4856_v9 = vld [vmem:[#allocation5 + $0x214] sm:$0xf0]  ;;  %v4380_v42 = vor.u32 %v4896_v30, %v4379_v28  ;;  %v1815_v28 = vperm.slane %v1811_v60, 2 }
 0x153   :  { %v1621_v40 = vpop.f32.mrf.mxu1  ;;  %v4220_v51 = vor.u32 %v4856_v9, %v4219_v47  ;;  %v4461_v47 = vld [vmem:[#allocation5 + $0x3f8] sm:$0xf0] }
 0x154   :  { %2625 = vmatmul.bf16.vlgmr.msra.gmra.mxu3 %v5172_v53  ;;  %v4864_v53 = vld [vmem:[#allocation5 + $0x254] sm:$0xf0]  ;;  %v4364_v40 = vor.u32 %v4892_v36, %v4363_v33  ;;  %v1816_v36 = vperm.slane %v1811_v60, 3 }
 0x155   :  { %v4252_v35 = vor.u32 %v4864_v53, %v4251_v31  ;;  %v4240_v53 = vor.u32 %v4858_v26, %v4237_v27 }
 0x157   :  { %v1632_v43 = vpop.f32.mrf.mxu3  ;;  %v1645_v45 = vpop.f32.mrf.mxu2  ;;  %2596 = vmatpush.bf16.msrb.mxu2 %v4252_v35  ;;  %v4221_v35 = vld [vmem:[#allocation5 + $0x218] sm:$0xf0] }
 0x158   :  { %v1633_v44 = vadd.f32 %v1632_v43, %v1620_v37  ;;  %v1660_v32 = vpop.f32.mrf.mxu0  ;;  %v4347_v43 = vld [vmem:[#allocation5 + $0x308] sm:$0xf] }
 0x159   :  { %v4448_v32 = vor.u32 %v4910_v14, %v4445_v11  ;;  %v4923_v14 = vld [vmem:[%s5424_s8 + $0x30] sm:$0xff] }
 0x15a   :  { %v1646_v20 = vadd.f32 %v1645_v45, %v1633_v44  ;;  %v4888_v44 = vld [vmem:[#allocation5 + $0x314] sm:$0xf0] }
 0x15b   :  { %2597 = vmatpush.bf16.msrb.mxu2 %v4236_v46  ;;  %v1671_v54 = vpop.f32.mrf.mxu1  ;;  %v4914_v46 = vld [vmem:[#allocation5 + $0x3ec] sm:$0xf]  ;;  %v4348_v9 = vor.u32 %v4888_v44, %v4347_v43 }
 0x15c   :  { %v1659_v49 = vadd.f32 %v1658_v6, %v1646_v20  ;;  %v4854_v6 = vld [vmem:[#allocation5 + $0x20c] sm:$0xf]  ;;  %v4464_v20 = vor.u32 %v4914_v46, %v4461_v47 }
 0x15d   :  { %v4224_v37 = vor.u32 %v4854_v6, %v4221_v35 }
 0x15e   :  { %v1672_v56 = vadd.f32 %v1671_v54, %v1659_v49  ;;  %v4906_v49 = vld [vmem:[#allocation5 + $0x3ac] sm:$0xf] }
 0x15f   :  { %v1634_v58 = vpop.f32.mrf.mxu3  ;;  %v1647_v34 = vpop.f32.mrf.mxu2  ;;  %2598 = vmatpush.bf16.msrb.mxu2 %v4220_v51  ;;  %v4429_v51 = vld [vmem:[#allocation5 + $0x3b8] sm:$0xf0]  ;;  %v4902_v54 = vld [vmem:[#allocation5 + $0x38c] sm:$0xf] }
 0x160   :  { %v1678_v61 = vmax.f32 %v1672_v56, 0.0  ;;  %v4416_v56 = vor.u32 %v4902_v54, %v4413_v55  ;;  %v4898_v58 = vld [vmem:[#allocation5 + $0x36c] sm:$0xf] }
 0x161   :  { %v4400_v59 = vor.u32 %v4898_v58, %v4397_v29 }
 0x162   :  { %v5211_v38 = vpack.c.bf16 %v1678_v61, %v1678_v61  ;;  %2599 = vmatmul.bf16.vlgmr.msrb.gmra.mxu2 %v5203_v1  ;;  %v4894_v61 = vld [vmem:[#allocation5 + $0x34c] sm:$0xf] }
 0x163   :  { %2643 = vmatpush.bf16.msra.mxu2 %v4336_v52  ;;  %v1673_v7 = vpop.f32.mrf.mxu1  ;;  %v4432_v52 = vor.u32 %v4906_v49, %v4429_v51  ;;  %v89_v49 = vstv %s5416_s0  ;;  %v4922_v51 = vld [vmem:[%s5424_s8 + $0x28] sm:$0xff] }
 0x164   :  { %2508 = vmatmul.bf16.vlgmr.msrb.gmra.mxu0 %v5211_v38  ;;  %v4365_v7 = vld [vmem:[#allocation5 + $0x338] sm:$0xf0] }
 0x165   :  { %2604 = vmatpush.bf16.msrb.mxu0 %v4460_v62 }
 0x167   :  { %2644 = vmatpush.bf16.msra.mxu2 %v4320_v39  ;;  %v4381_v39 = vld [vmem:[#allocation5 + $0x358] sm:$0xf0] }
 0x168   :  { %v4384_v4 = vor.u32 %v4894_v61, %v4381_v39  ;;  %v4932_v61 = vld [vmem:[%s5424_s8 + $0x78] sm:$0xff] }
 0x169   :  { %2605 = vmatpush.bf16.msrb.mxu0 %v4444_v8  ;;  %3103 = vmatpush.bf16.msrb.mxu1 %v4932_v61  ;;  %v4937_v61 = vld [vmem:[%s5424_s8 + $0xa0] sm:$0xff] }
 0x16b   :  { %2645 = vmatpush.bf16.msra.mxu2 %v4304_v5  ;;  %v4890_v5 = vld [vmem:[#allocation5 + $0x32c] sm:$0xf] }
 0x16c   :  { %v4368_v8 = vor.u32 %v4890_v5, %v4365_v7  ;;  %v4931_v5 = vld [vmem:[%s5424_s8 + $0x70] sm:$0xff] }
 0x16d   :  { %2606 = vmatpush.bf16.msrb.mxu0 %v4428_v15  ;;  %v73_v15 = vmul.f32 %v4958_v41, %v71_v0  ;;  %3104 = vmatpush.bf16.msrb.mxu1 %v4931_v5  ;;  %v4936_v5 = vld [vmem:[%s5424_s8 + $0x98] sm:$0xff] }
 0x16f   :  { %2646 = vmatpush.bf16.msra.mxu2 %v4288_v13  ;;  %v74_v18 = vsub.f32 1.0, %v73_v15 }
 0x171   :  { %2607 = vmatpush.bf16.msrb.mxu0 %v4412_v48  ;;  %v75_v48 = vmul.f32 %v4958_v41, %v74_v18 }
 0x173   :  { %2647 = vmatpush.bf16.msra.mxu2 %v4272_v57  ;;  %v1814_v57 = vperm.slane %v1811_v60, 1  ;;  %v76_v2 = vadd.f32 %v4958_v41, %v75_v48 }
 0x174   :  { %2560 = vmatmul.bf16.vlgmr.msra.gmra.mxu0 %v5211_v38 }
 0x175   :  { %2608 = vmatpush.bf16.msrb.mxu0 %v4396_v25 }
 0x177   :  { %v2470_v31 = vpop.f32.mrf.mxu3  ;;  %2648 = vmatpush.bf16.msra.mxu2 %v4256_v24  ;;  %v80_v24 = vsel %vm79_vm3, %v4958_v41, %v76_v2  ;;  %v4917_v2 = vld [vmem:[%s5424_s8] sm:$0xff] }
 0x178   :  { %v85_v26 = vsel %vm82_vm4, %v84_v21, %v80_v24 }
 0x179   :  { %2609 = vmatpush.bf16.msrb.mxu0 %v4380_v42  ;;  %4949 = vpush %v85_v26 }
 0x17b   :  { %2649 = vmatpush.bf16.msra.mxu2 %v4240_v53 }
 0x17d   :  { %2610 = vmatpush.bf16.msrb.mxu0 %v4364_v40 }
 0x17f   :  { %v2472_v45 = vpop.f32.mrf.mxu3  ;;  %2650 = vmatpush.bf16.msra.mxu2 %v4224_v37 }
 0x181   :  { %2611 = vmatpush.bf16.msrb.mxu0 %v4348_v9  ;;  %v4924_v9 = vld [vmem:[%s5424_s8 + $0x38] sm:$0xff] }
 0x182   :  { %2651 = vmatmul.bf16.vlgmr.msra.gmra.mxu2 %v5203_v1  ;;  %v1813_v1 = vperm.slane %v1811_v60, 0  ;;  %3090 = vmatpush.bf16.msrb.mxu3 %v4924_v9  ;;  %v4921_v60 = vld [vmem:[%s5424_s8 + $0x20] sm:$0xff] }
 0x184   :  { %2612 = vmatmul.bf16.vlgmr.msrb.gmra.mxu0 %v5211_v38  ;;  %v2471_v34 = vadd.f32 %v2470_v31, %v1813_v1 }
 0x185   :  { %2656 = vmatpush.bf16.msra.mxu0 %v4464_v20  ;;  %v87_v20 = vlaneseq }
 0x186   :  { %3091 = vmatpush.bf16.msrb.mxu3 %v4923_v14  ;;  %v4926_v14 = vld [vmem:[%s5424_s8 + $0x48] sm:$0xff] }
 0x187   :  { %v2483_v62 = vpop.f32.mrf.mxu1  ;;  %v88_v11 = vshrl.u32 %v87_v20, 7 }
 0x188   :  { %v2484_v3 = vadd.f32 %v2483_v62, %v2471_v34  ;;  %v4920_v34 = vld [vmem:[%s5424_s8 + $0x18] sm:$0xff] }
 0x189   :  { %2657 = vmatpush.bf16.msra.mxu0 %v4448_v32  ;;  %vm90_vm5 = vcmp.lt.s32.totalorder %v88_v11, %v89_v49  ;;  %v4938_v11 = vld [vmem:[%s5424_s8 + $0xa8] sm:$0xff] }
 0x18a   :  { %3092 = vmatpush.bf16.msrb.mxu3 %v4922_v51 }
 0x18d   :  { %2658 = vmatpush.bf16.msra.mxu0 %v4432_v52 }
 0x18e   :  { %3093 = vmatpush.bf16.msrb.mxu3 %v4921_v60 }
 0x18f   :  { %v2485_v12 = vpop.f32.mrf.mxu1 }
 0x190   :  { %v4918_v12 = vld [vmem:[%s5424_s8 + $0x8] sm:$0xff] }
 0x191   :  { %2659 = vmatpush.bf16.msra.mxu0 %v4416_v56  ;;  %v5027_v56 = vmov 0.0  }
 0x192   :  { %v5247_v1 = vsel %vm90_vm5, 1.0, %v5027_v56  ;;  %3094 = vmatpush.bf16.msrb.mxu3 %v4920_v34  ;;  %v4925_v34 = vld [vmem:[%s5424_s8 + $0x40] sm:$0xff] }
 0x195   :  { %2660 = vmatpush.bf16.msra.mxu0 %v4400_v59 }
 0x197   :  { %v2522_v63 = vpop.f32.mrf.mxu3  ;;  %v2535_v23 = vpop.f32.mrf.mxu1 }
 0x198   :  { %v2523_v22 = vadd.f32 %v2522_v63, %v1814_v57 }
 0x199   :  { %2661 = vmatpush.bf16.msra.mxu0 %v4384_v4  ;;  %v4919_v4 = vld [vmem:[%s5424_s8 + $0x10] sm:$0xff] }
 0x19a   :  { %v5224_v25 = vadd.f32 %v2535_v23, %v2523_v22  ;;  %3095 = vmatpush.bf16.msrb.mxu3 %v4919_v4  ;;  %v4929_v22 = vld [vmem:[%s5424_s8 + $0x60] sm:$0xff] }
 0x19d   :  { %2662 = vmatpush.bf16.msra.mxu0 %v4368_v8 }
 0x19e   :  { %3096 = vmatpush.bf16.msrb.mxu3 %v4918_v12 }
 0x19f   :  { %v2524_v13 = vpop.f32.mrf.mxu3  ;;  %v2537_v27 = vpop.f32.mrf.mxu1 }
 0x1a0   :  { %v4930_v13 = vld [vmem:[%s5424_s8 + $0x68] sm:$0xff] }
 0x1a1   :  { %2663 = vmatpush.bf16.msra.mxu0 %v4352_v16  ;;  %3105 = vmatpush.bf16.msrb.mxu1 %v4930_v13 }
 0x1a2   :  { %3097 = vmatpush.bf16.msrb.mxu3 %v4917_v2  ;;  %v5348_v2 = vld [vmem:[%s5423_s7] sm:$0xf] }
 0x1a4   :  { %2664 = vmatmul.bf16.vlgmr.msra.gmra.mxu0 %v5211_v38 }
 0x1a5   :  { %3106 = vmatpush.bf16.msrb.mxu1 %v4929_v22 }
 0x1aa   :  { %s4950_s30 = spop %4949 }
 0x1ab   :  { %v5275_v19 = vstv %s4950_s30 }
 0x1af   :  { %v2587_v53 = vpop.f32.mrf.mxu1 }
 0x1b7   :  { %v2574_v30 = vpop.f32.mrf.mxu3  ;;  %v2589_v35 = vpop.f32.mrf.mxu1 }
 0x1b8   :  { %v2575_v31 = vadd.f32 %v2574_v30, %v1815_v28  ;;  %v4928_v30 = vld [vmem:[%s5424_s8 + $0x58] sm:$0xff] }
 0x1b9   :  { %3107 = vmatpush.bf16.msrb.mxu1 %v4928_v30 }
 0x1ba   :  { %v5227_v42 = vadd.f32 %v2587_v53, %v2575_v31  ;;  %v4940_v31 = vld [vmem:[%s5424_s8 + $0xb8] sm:$0xff] }
 0x1bb   :  { %3116 = vmatpush.bf16.msrb.mxu2 %v4940_v31 }
 0x1bf   :  { %v2576_v6 = vpop.f32.mrf.mxu3 }
 0x1c3   :  { %v2496_v33 = vpop.f32.mrf.mxu2 }
 0x1c4   :  { %v2497_v52 = vadd.f32 %v2496_v33, %v2484_v3 }
 0x1cb   :  { %v2498_v44 = vpop.f32.mrf.mxu2 }
 0x1cc   :  { %v4939_v44 = vld [vmem:[%s5424_s8 + $0xb0] sm:$0xff] }
 0x1cd   :  { %3117 = vmatpush.bf16.msrb.mxu2 %v4939_v44  ;;  %v4948_v44 = vld [vmem:[%s5424_s8 + $0xf8] sm:$0xff] }
 0x1ce   :  { %3129 = vmatpush.bf16.msrb.mxu0 %v4948_v44 }
 0x1cf   :  { %v2639_v43 = vpop.f32.mrf.mxu1 }
 0x1d1   :  { %3118 = vmatpush.bf16.msrb.mxu2 %v4938_v11 }
 0x1d3   :  { %v2548_v47 = vpop.f32.mrf.mxu2 }
 0x1d4   :  { %v2549_v15 = vadd.f32 %v2548_v47, %v5224_v25 }
 0x1d5   :  { %3119 = vmatpush.bf16.msrb.mxu2 %v4937_v61 }
 0x1d7   :  { %v2626_v37 = vpop.f32.mrf.mxu3  ;;  %v2641_v46 = vpop.f32.mrf.mxu1 }
 0x1d8   :  { %v2627_v40 = vadd.f32 %v2626_v37, %v1816_v36 }
 0x1d9   :  { %3120 = vmatpush.bf16.msrb.mxu2 %v4936_v5 }
 0x1da   :  { %v5229_v45 = vadd.f32 %v2639_v43, %v2627_v40  ;;  %v4927_v43 = vld [vmem:[%s5424_s8 + $0x50] sm:$0xff] }
 0x1db   :  { %v2550_v32 = vpop.f32.mrf.mxu2  ;;  %3108 = vmatpush.bf16.msrb.mxu1 %v4927_v43 }
 0x1df   :  { %v2628_v38 = vpop.f32.mrf.mxu3  ;;  %3109 = vmatpush.bf16.msrb.mxu1 %v4926_v14 }
 0x1e1   :  { %v2509_v54 = vpop.f32.mrf.mxu0 }
 0x1e2   :  { %v2510_v55 = vadd.f32 %v2509_v54, %v2497_v52 }
 0x1e3   :  { %3110 = vmatpush.bf16.msrb.mxu1 %v4925_v34 }
 0x1e4   :  { %v5249_v58 = vmax.f32 %v2510_v55, 0.0 }
 0x1e5   :  { %v5251_v29 = vpop.f32.mrf.mxu2 }
 0x1e6   :  { %v2673_v59 = vmul.f32 %v5247_v1, %v5249_v58  ;;  %v2601_v32 = vadd.f32 %v5251_v29, %v5227_v42 }
 0x1e8   :  { %v2677_v39 = vrot.slane %v2673_v59, 4  ;;  %v2701_v62 = vmul.f32 %v2673_v59, %v5249_v58 }
 0x1e9   :  { %v2511_v63 = vpop.f32.mrf.mxu0 }
 0x1ea   :  { %v2678_v0 = vadd.f32 %v2677_v39, %v2673_v59  ;;  %v2705_v3 = vrot.slane %v2701_v62, 4 }
 0x1ec   :  { %v2679_v7 = vrot.slane %v2678_v0, 2  ;;  %v2706_v8 = vadd.f32 %v2705_v3, %v2701_v62 }
 0x1ed   :  { %v2602_v10 = vpop.f32.mrf.mxu2 }
 0x1ee   :  { %v2680_v50 = vadd.f32 %v2679_v7, %v2678_v0  ;;  %v2707_v41 = vrot.slane %v2706_v8, 2 }
 0x1f0   :  { %v2681_v16 = vrot.slane %v2680_v50, 1  ;;  %v2708_v17 = vadd.f32 %v2707_v41, %v2706_v8  ;;  %v5339_v41 = vld [vmem:[%s5422_s6] sm:$0xf] }
 0x1f1   :  { %v2561_v18 = vpop.f32.mrf.mxu0  ;;  %v2801_v61 = vperm.slane %v5339_v41, 1 }
 0x1f2   :  { %v2682_v57 = vadd.f32 %v2681_v16, %v2680_v50  ;;  %v2709_v48 = vrot.slane %v2708_v17, 1  ;;  %v2562_v21 = vadd.f32 %v2561_v18, %v2549_v15 }
 0x1f4   :  { %v2710_v23 = vadd.f32 %v2709_v48, %v2708_v17  ;;  %v5283_v24 = vmax.f32 %v2562_v21, 0.0  ;;  %v5286_v25 = vmul.f32 %v5275_v19, %v2682_v57  ;;  %v4935_v57 = vld [vmem:[%s5424_s8 + $0x90] sm:$0xff]  ;;  %v2800_v21 = vperm.slane %v5339_v41, 0 }
 0x1f5   :  { %3121 = vmatpush.bf16.msrb.mxu2 %v4935_v57 }
 0x1f6   :  { %v2674_v26 = vmul.f32 %v5247_v1, %v5283_v24  ;;  %v2734_v27 = vmul.f32 %v5275_v19, %v2710_v23  ;;  %v2738_v28 = vmul.f32 %v5286_v25, %v5286_v25 }
 0x1f8   :  { %v2683_v53 = vrot.slane %v2674_v26, 4  ;;  %v2702_v6 = vmul.f32 %v2674_v26, %v5283_v24  ;;  %v2742_v35 = vsub.f32 %v2734_v27, %v2738_v28 }
 0x1f9   :  { %v2563_v33 = vpop.f32.mrf.mxu0 }
 0x1fa   :  { %v2684_v36 = vadd.f32 %v2683_v53, %v2674_v26  ;;  %v2711_v37 = vrot.slane %v2702_v6, 4  ;;  %v2750_v40 = vadd.f32 1e-05, %v2742_v35  ;;  %v2746_v26 = vsub.f32 %v5249_v58, %v5286_v25  ;;  %v4933_v25 = vld [vmem:[%s5424_s8 + $0x80] sm:$0xff] }
 0x1fb   :  { %v2814_v53 = vperm.slane %v5348_v2, 0 }
 0x1fc   :  { %v2685_v38 = vrot.slane %v2684_v36, 2  ;;  %v2712_v46 = vadd.f32 %v2711_v37, %v2702_v6  ;;  %4959 = vrsqrt.f32 %v2750_v40  ;;  %vm2760_vm7 = vweird.f32 %v2750_v40  ;;  %v4934_v6 = vld [vmem:[%s5424_s8 + $0x88] sm:$0xff] }
 0x1fd   :  { %3122 = vmatpush.bf16.msrb.mxu2 %v4934_v6 }
 0x1fe   :  { %v2686_v47 = vadd.f32 %v2685_v38, %v2684_v36  ;;  %v2713_v9 = vrot.slane %v2712_v46, 2 }
 0x200   :  { %v2687_v49 = vrot.slane %v2686_v47, 1  ;;  %v2714_v51 = vadd.f32 %v2713_v9, %v2712_v46 }
 0x201   :  { %v2613_v52 = vpop.f32.mrf.mxu0  ;;  %3123 = vmatpush.bf16.msrb.mxu2 %v4933_v25 }
 0x202   :  { %v4960_v54 = vpop.eup %4959  ;;  %v2688_v55 = vadd.f32 %v2687_v49, %v2686_v47  ;;  %v2715_v60 = vrot.slane %v2714_v51, 1  ;;  %v2614_v56 = vadd.f32 %v2613_v52, %v2601_v32  ;;  %v4947_v49 = vld [vmem:[%s5424_s8 + $0xf0] sm:$0xff] }
 0x203   :  { %v2755_v42 = vmul.f32 %v4960_v54, %v2750_v40  ;;  %vm2761_vm6 = vweird.f32 %v4960_v54  ;;  %3130 = vmatpush.bf16.msrb.mxu0 %v4947_v49 }
 0x204   :  { %v2716_v29 = vadd.f32 %v2715_v60, %v2714_v51  ;;  %v5323_v39 = vmul.f32 %v5275_v19, %v2688_v55  ;;  %v5325_v62 = vmax.f32 %v2614_v56, 0.0  ;;  %vm2762_vm8 = vmor %vm2760_vm7, %vm2761_vm6  ;;  %v4946_v60 = vld [vmem:[%s5424_s8 + $0xe8] sm:$0xff] }
 0x205   :  { %v5314_v59 = vpop.f32.mrf.mxu2  ;;  %v2756_v63 = vmul.f32 %v4960_v54, %v2755_v42 }
 0x206   :  { %v2735_v0 = vmul.f32 %v5275_v19, %v2716_v29  ;;  %v2739_v3 = vmul.f32 %v5323_v39, %v5323_v39  ;;  %v2675_v4 = vmul.f32 %v5247_v1, %v5325_v62  ;;  %v2747_v34 = vsub.f32 %v5283_v24, %v5323_v39 }
 0x207   :  { %v2757_v7 = vmul.f32 0.5, %v2756_v63  ;;  %3131 = vmatpush.bf16.msrb.mxu0 %v4946_v60  ;;  %v2653_v42 = vadd.f32 %v5314_v59, %v5229_v45  ;;  %v4944_v45 = vld [vmem:[%s5424_s8 + $0xd8] sm:$0xff]  ;;  %v2803_v60 = vperm.slane %v5339_v41, 3 }
 0x208   :  { %v2743_v8 = vsub.f32 %v2735_v0, %v2739_v3  ;;  %v2689_v10 = vrot.slane %v2675_v4, 4  ;;  %v2703_v50 = vmul.f32 %v2675_v4, %v5325_v62  ;;  %v2815_v3 = vperm.slane %v5348_v2, 1 }
 0x209   :  { %v2615_v12 = vpop.f32.mrf.mxu0  ;;  %v2758_v13 = vsub.f32 1.5, %v2757_v7 }
 0x20a   :  { %v2751_v15 = vadd.f32 1e-05, %v2743_v8  ;;  %v2690_v16 = vadd.f32 %v2689_v10, %v2675_v4  ;;  %v2717_v17 = vrot.slane %v2703_v50, 4  ;;  %v4945_v4 = vld [vmem:[%s5424_s8 + $0xe0] sm:$0xff] }
 0x20b   :  { %v2759_v48 = vmul.f32 %v4960_v54, %v2758_v13  ;;  %3132 = vmatpush.bf16.msrb.mxu0 %v4945_v4 }
 0x20c   :  { %4961 = vrsqrt.f32 %v2751_v15  ;;  %v2691_v22 = vrot.slane %v2690_v16, 2  ;;  %v2718_v23 = vadd.f32 %v2717_v17, %v2703_v50  ;;  %vm2770_vm10 = vweird.f32 %v2751_v15  ;;  %v4943_v17 = vld [vmem:[%s5424_s8 + $0xd0] sm:$0xff] }
 0x20d   :  { %v2654_v18 = vpop.f32.mrf.mxu2  ;;  %v2763_v27 = vsel %vm2762_vm8, %v4960_v54, %v2759_v48 }
 0x20e   :  { %v2692_v28 = vadd.f32 %v2691_v22, %v2690_v16  ;;  %v2719_v30 = vrot.slane %v2718_v23, 2  ;;  %v2794_v31 = vmul.f32 %v2763_v27, %v2746_v26 }
 0x20f   :  { %3133 = vmatpush.bf16.msrb.mxu0 %v4944_v45 }
 0x210   :  { %v2693_v35 = vrot.slane %v2692_v28, 1  ;;  %v2720_v33 = vadd.f32 %v2719_v30, %v2718_v23  ;;  %v2808_v36 = vmul.f32 %v2800_v21, %v2794_v31  ;;  %v4942_v23 = vld [vmem:[%s5424_s8 + $0xc8] sm:$0xff]  ;;  %v2802_v31 = vperm.slane %v5339_v41, 2 }
 0x212   :  { %v4962_v37 = vpop.eup %4961  ;;  %v2694_v40 = vadd.f32 %v2693_v35, %v2692_v28  ;;  %v2721_v43 = vrot.slane %v2720_v33, 1  ;;  %v2822_v58 = vadd.f32 %v2814_v53, %v2808_v36 }
 0x213   :  { %v2765_v38 = vmul.f32 %v4962_v37, %v2751_v15  ;;  %vm2771_vm9 = vweird.f32 %v4962_v37  ;;  %3134 = vmatpush.bf16.msrb.mxu0 %v4943_v17 }
 0x214   :  { %v2722_v46 = vadd.f32 %v2721_v43, %v2720_v33  ;;  %v5363_v47 = vmul.f32 %v5275_v19, %v2694_v40  ;;  %v2826_v9 = vpack.c.bf16 %v2822_v58, %v2822_v58  ;;  %vm2772_vm11 = vmor %vm2770_vm10, %vm2771_vm9  ;;  %v4941_v33 = vld [vmem:[%s5424_s8 + $0xc0] sm:$0xff] }
 0x215   :  { %v2766_v14 = vmul.f32 %v4962_v37, %v2765_v38 }
 0x216   :  { %v2736_v11 = vmul.f32 %v5275_v19, %v2722_v46  ;;  %v2740_v32 = vmul.f32 %v5363_v47, %v5363_v47  ;;  %3098 = vmatmul.bf16.vlgmr.msrb.gmra.mxu3 %v2826_v9  ;;  %v2748_v30 = vsub.f32 %v5325_v62, %v5363_v47 }
 0x217   :  { %v2767_v51 = vmul.f32 0.5, %v2766_v14  ;;  %3135 = vmatpush.bf16.msrb.mxu0 %v4942_v23 }
 0x218   :  { %v2744_v52 = vsub.f32 %v2736_v11, %v2740_v32 }
 0x219   :  { %v2768_v54 = vsub.f32 1.5, %v2767_v51 }
 0x21a   :  { %v2752_v55 = vadd.f32 1e-05, %v2744_v52 }
 0x21b   :  { %v2769_v56 = vmul.f32 %v4962_v37, %v2768_v54  ;;  %3136 = vmatpush.bf16.msrb.mxu0 %v4941_v33 }
 0x21c   :  { %4963 = vrsqrt.f32 %v2752_v55  ;;  %vm2780_vm13 = vweird.f32 %v2752_v55 }
 0x21d   :  { %v2773_v29 = vsel %vm2772_vm11, %v4962_v37, %v2769_v56  ;;  %v2816_v37 = vperm.slane %v5348_v2, 2 }
 0x21e   :  { %v2795_v0 = vmul.f32 %v2773_v29, %v2747_v34  ;;  %v2817_v34 = vperm.slane %v5348_v2, 3 }
 0x220   :  { %v2809_v7 = vmul.f32 %v2801_v61, %v2795_v0 }
 0x221   :  { %v2665_v63 = vpop.f32.mrf.mxu0 }
 0x222   :  { %v2666_v5 = vadd.f32 %v2665_v63, %v2653_v42  ;;  %v4964_v39 = vpop.eup %4963  ;;  %v2823_v8 = vadd.f32 %v2815_v3, %v2809_v7 }
 0x223   :  { %v2775_v59 = vmul.f32 %v4964_v39, %v2752_v55  ;;  %vm2781_vm12 = vweird.f32 %v4964_v39 }
 0x224   :  { %v5383_v24 = vmax.f32 %v2666_v5, 0.0  ;;  %v2827_v50 = vpack.c.bf16 %v2823_v8, %v2823_v8  ;;  %vm2782_vm14 = vmor %vm2780_vm13, %vm2781_vm12  ;;  %v3144_v8 = vand.u32 127, %v87_v20 }
 0x225   :  { %v2776_v12 = vmul.f32 %v4964_v39, %v2775_v59 }
 0x226   :  { %v2676_v10 = vmul.f32 %v5247_v1, %v5383_v24  ;;  %3111 = vmatmul.bf16.vlgmr.msrb.gmra.mxu1 %v2827_v50  ;;  %vm3145_vm2 = vcmp.lt.s32.totalorder %v3144_v8, 10 }
 0x227   :  { %v2777_v18 = vmul.f32 0.5, %v2776_v12 }
 0x228   :  { %v2695_v13 = vrot.slane %v2676_v10, 4  ;;  %v2704_v15 = vmul.f32 %v2676_v10, %v5383_v24 }
 0x229   :  { %v2667_v16 = vpop.f32.mrf.mxu0  ;;  %v2778_v21 = vsub.f32 1.5, %v2777_v18 }
 0x22a   :  { %v2696_v57 = vadd.f32 %v2695_v13, %v2676_v10  ;;  %v2723_v48 = vrot.slane %v2704_v15, 4 }
 0x22b   :  { %v2779_v26 = vmul.f32 %v4964_v39, %v2778_v21 }
 0x22c   :  { %v2697_v22 = vrot.slane %v2696_v57, 2  ;;  %v2724_v1 = vadd.f32 %v2723_v48, %v2704_v15 }
 0x22d   :  { %v2783_v53 = vsel %vm2782_vm14, %v4964_v39, %v2779_v26 }
 0x22e   :  { %v2698_v27 = vadd.f32 %v2697_v22, %v2696_v57  ;;  %v2725_v28 = vrot.slane %v2724_v1, 2  ;;  %v2796_v36 = vmul.f32 %v2783_v53, %v2748_v30 }
 0x230   :  { %v2699_v6 = vrot.slane %v2698_v27, 1  ;;  %v2726_v35 = vadd.f32 %v2725_v28, %v2724_v1  ;;  %v2810_v58 = vmul.f32 %v2802_v31, %v2796_v36 }
 0x232   :  { %v2700_v40 = vadd.f32 %v2699_v6, %v2698_v27  ;;  %v2727_v43 = vrot.slane %v2726_v35, 1  ;;  %v2824_v44 = vadd.f32 %v2816_v37, %v2810_v58 }
 0x234   :  { %v2728_v25 = vadd.f32 %v2727_v43, %v2726_v35  ;;  %v2733_v62 = vmul.f32 %v5275_v19, %v2700_v40  ;;  %v2828_v47 = vpack.c.bf16 %v2824_v44, %v2824_v44 }
 0x236   :  { %v2737_v38 = vmul.f32 %v5275_v19, %v2728_v25  ;;  %v2741_v46 = vmul.f32 %v2733_v62, %v2733_v62  ;;  %3124 = vmatmul.bf16.vlgmr.msrb.gmra.mxu2 %v2828_v47  ;;  %v2749_v55 = vsub.f32 %v5383_v24, %v2733_v62  ;;  %v4956_v24 = vld [vmem:[%s5425_s9] ss:$0 sm:$0xff] }
 0x238   :  { %v2745_v9 = vsub.f32 %v2737_v38, %v2741_v46 }
 0x23a   :  { %v2753_v14 = vadd.f32 1e-05, %v2745_v9 }
 0x23c   :  { %4965 = vrsqrt.f32 %v2753_v14  ;;  %vm2790_vm0 = vweird.f32 %v2753_v14 }
 0x242   :  { %v4966_v11 = vpop.eup %4965 }
 0x243   :  { %v2785_v32 = vmul.f32 %v4966_v11, %v2753_v14  ;;  %vm2791_vm15 = vweird.f32 %v4966_v11 }
 0x244   :  { %vm2792_vm1 = vmor %vm2790_vm0, %vm2791_vm15 }
 0x245   :  { %v2786_v49 = vmul.f32 %v4966_v11, %v2785_v32 }
 0x247   :  { %v2787_v51 = vmul.f32 0.5, %v2786_v49 }
 0x249   :  { %v2788_v52 = vsub.f32 1.5, %v2787_v51 }
 0x24b   :  { %v2789_v54 = vmul.f32 %v4966_v11, %v2788_v52 }
 0x24d   :  { %v2793_v19 = vsel %vm2792_vm1, %v4966_v11, %v2789_v54 }
 0x24e   :  { %v2797_v56 = vmul.f32 %v2793_v19, %v2749_v55 }
 0x250   :  { %v2811_v61 = vmul.f32 %v2803_v60, %v2797_v56 }
 0x252   :  { %v2825_v42 = vadd.f32 %v2817_v34, %v2811_v61 }
 0x254   :  { %v2829_v29 = vpack.c.bf16 %v2825_v42, %v2825_v42 }
 0x256   :  { %3137 = vmatmul.bf16.vlgmr.msrb.gmra.mxu0 %v2829_v29 }
 0x299   :  { %v3099_v63 = vpop.f32.mrf.mxu3 }
 0x29a   :  { %v3100_v39 = vadd.f32 %v4956_v24, %v3099_v63 }
 0x2a1   :  { %v3101_v0 = vpop.f32.mrf.mxu3 }
 0x2a3   :  { %v3112_v3 = vpop.f32.mrf.mxu1 }
 0x2a4   :  { %v3113_v41 = vadd.f32 %v3112_v3, %v3100_v39 }
 0x2ab   :  { %v3114_v4 = vpop.f32.mrf.mxu1 }
 0x2b9   :  { %v3125_v5 = vpop.f32.mrf.mxu2 }
 0x2ba   :  { %v3126_v45 = vadd.f32 %v3125_v5, %v3113_v41 }
 0x2c1   :  { %v3127_v7 = vpop.f32.mrf.mxu2 }
 0x2d3   :  { %v3138_v2 = vpop.f32.mrf.mxu0 }
 0x2d4   :  { %v3139_v59 = vadd.f32 %v3138_v2, %v3126_v45 }
 0x2d6   :  { %v3142_v10 = vmax.f32 %v3139_v59, 0.0 }
 0x2d8   :  { %v3146_v50 = vsel %vm3145_vm2, %v3142_v10, -1e+30 }
 0x2d9   :  { %3147 = vmax.xlane.f32.xlu0 %v3146_v50 }
 0x2db   :  { %v3140_v12 = vpop.f32.mrf.mxu0 }
 0x34c   :  { %v3148_v13 = vpop.xlane.xlu0 %3147 }
 0x34d   :  { %v3149_v15 = vsub.f32 %v3146_v50, %v3148_v13 }
 0x34f   :  { %v3150_v16 = vmul.f32 1.442695, %v3149_v15 }
 0x351   :  { %4967 = vpow2.f32 %v3150_v16 }
 0x357   :  { %v4968_v17 = vpop.eup %4967 }
 0x358   :  { %3152 = vadd.xlane.f32.xlu0 %v4968_v17 }
 0x3cb   :  { %v3153_v18 = vpop.xlane.xlu0 %3152 }
 0x3cc   :  { %4969 = vlog2.f32 %v3153_v18 }
 0x3d2   :  { %v4970_v57 = vpop.eup %4969 }
 0x3d3   :  { %v3155_v48 = vmul.f32 0.6931472, %v4970_v57 }
 0x3d5   :  { %v3156_v21 = vsub.f32 %v3149_v15, %v3155_v48 }
 0x3d7   :  { %3157 = vst [vmem:[%s5426_s10] sm:$0xff] %v3156_v21 }
 0x3d8   :  { %3162 = vsyncpa [#allocation4], 1 }
 0x3d9   :  { %3163 = vsyncpa [#allocation6], 1 }

</bundles_post_ra>
